<compile_context>
chip_gen: v5e
topology: v5e:2x2
jax: 0.10.0
libtpu: 0.0.40
codegen_flags: <defaults>
</compile_context>

<pallas_src>
import numpy as np
import jax
import jax.numpy as jnp
from jax import lax
from jax.experimental import pallas as pl
from jax.experimental.pallas import tpu as pltpu

INPUT_SIZE = 14      # len(features)
HIDDEN_SIZE = 128
NUM_LAYERS = 2
OUTPUT_SIZE = 1


def lstm_kernel(x_ref,       # (Tc, Bt, F+1)  time chunk of x, ones column appended, f32
                wih0_ref,    # (F+1, 4H)      layer-0 input weights + bias row, bf16 (packed gates)
                whh0_ref,    # (H, 4H)        layer-0 recurrent weights, bf16 (packed)
                wih1_ref,    # (H, 4H)        layer-1 input weights, bf16 (packed)
                whh1_ref,    # (H, 4H)        layer-1 recurrent weights, bf16 (packed)
                b1_ref,      # (1, 4H)        layer-1 bias (b_ih+b_hh, packed), f32
                h2_ref,      # out: (Bt, H)   last-timestep top-layer hidden state
                xw0_ref,     # scratch: (Tc*Bt, 4H) hoisted layer-0 projection (f32)
                state_ref):  # scratch: (4, Bt, H)  carried (h1, c1, h2, c2) across chunks
    Tc, Bt, F1 = x_ref.shape
    H = h2_ref.shape[1]
    H4 = 4 * H

    # Reset the carried LSTM state at the first time chunk of every batch tile.
    @pl.when(pl.program_id(1) == 0)
    def _():
        state_ref[...] = jnp.zeros_like(state_ref)

    # Hoisted layer-0 input projection for this chunk: one MXU matmul with the bias
    # folded in (ones column on x / bias row on Wih0). bf16 operands, f32 accumulate.
    x2 = x_ref[...].reshape(Tc * Bt, F1).astype(jnp.bfloat16)
    xw0_ref[...] = jnp.dot(x2, wih0_ref[...], preferred_element_type=jnp.float32)

    # Loop-invariant broadcast hoisted once per chunk (JAX doesn't CSE broadcasts).
    b1 = jnp.broadcast_to(b1_ref[...], (Bt, H4))

    def activate(gates, c):
        # Packed gate columns: [0.5*z_i | 0.5*z_f | 0.5*z_o | z_g]
        t_all = jnp.tanh(gates)                    # single wide EUP call (Bt, 4H)
        sig = t_all[:, :3 * H] * 0.5 + 0.5         # sigmoid(z_i), sigmoid(z_f), sigmoid(z_o)
        i = sig[:, 0:H]
        f = sig[:, H:2 * H]
        o = sig[:, 2 * H:3 * H]
        g = t_all[:, 3 * H:]                       # tanh(z_g)
        c_new = f * c + i * g
        h_new = o * jnp.tanh(c_new)
        return h_new, c_new

    def step(t, carry):
        h1, c1, h2, c2 = carry
        row = pl.multiple_of(t * Bt, 8)            # Bt is a multiple of 8 (asserted in wrapper)
        # Layer-1's h2-dependent half: depends only on the t-1 carry, so it is issued
        # up-front and overlaps with layer-0's recurrent matmul (off the critical path).
        g1_part = jnp.dot(h2.astype(jnp.bfloat16), whh1_ref[...],
                          preferred_element_type=jnp.float32) + b1
        # Layer 0: only the recurrent matmul is on the serial critical path.
        g0 = xw0_ref[pl.ds(row, Bt), :] + jnp.dot(
            h1.astype(jnp.bfloat16), whh0_ref[...],
            preferred_element_type=jnp.float32)
        h1, c1 = activate(g0, c1)
        # Layer 1: only the h1-dependent half remains on the critical path.
        g1 = jnp.dot(h1.astype(jnp.bfloat16), wih1_ref[...],
                     preferred_element_type=jnp.float32) + g1_part
        h2, c2 = activate(g1, c2)
        return h1, c1, h2, c2

    carry0 = (state_ref[0], state_ref[1], state_ref[2], state_ref[3])
    h1, c1, h2, c2 = lax.fori_loop(0, Tc, step, carry0, unroll=min(Tc, 8))

    # Persist the carried state for the next time chunk; emit current top-layer h.
    state_ref[0] = h1
    state_ref[1] = c1
    state_ref[2] = h2
    state_ref[3] = c2
    h2_ref[...] = h2


def _pack_params(params):
    """Build kernel operands from canonical PyTorch-convention params.

    - permute gate columns i|f|g|o -> i|f|o|g
    - pre-scale sigmoid-gate columns by 0.5 (sigmoid(z) = 0.5*tanh(0.5*z)+0.5)
    - fold layer-0 bias into Wih0 as an extra row (ones column appended to x)
    - cast all MXU weight operands to bf16 (b1 stays f32; added into f32 accum)
    """
    H = HIDDEN_SIZE

    def pack(w):
        i = w[..., 0 * H:1 * H]
        f = w[..., 1 * H:2 * H]
        g = w[..., 2 * H:3 * H]
        o = w[..., 3 * H:4 * H]
        return jnp.concatenate([0.5 * i, 0.5 * f, 0.5 * o, g], axis=-1)

    wih0 = jnp.concatenate([pack(params["wih0"]), pack(params["b0"])], axis=0)  # (F+1, 4H)
    wih0 = wih0.astype(jnp.bfloat16)
    whh0 = pack(params["whh0"]).astype(jnp.bfloat16)
    wih1 = pack(params["wih1"]).astype(jnp.bfloat16)
    whh1 = pack(params["whh1"]).astype(jnp.bfloat16)
    b1 = pack(params["b1"]).astype(jnp.float32)                                  # (1, 4H)
    return wih0, whh0, wih1, whh1, b1


def _pick_time_chunk(T, requested=None):
    target = min(T, requested if requested is not None else 32)
    for c in range(target, 0, -1):
        if T % c == 0:
            return c
    return 1


def _pick_batch_tile(B_pad, target=128):
    if B_pad <= target:
        return B_pad
    for bt in range(target, 0, -8):
        if B_pad % bt == 0:
            return bt
    return 8


def _vmem_limit_bytes(Tc, Bt, F1, H):
    """Size the scoped-VMEM limit from the actual buffers (padded layout), + headroom."""
    def padded(shape, itemsize):
        s = list(shape)
        s[-1] = ((s[-1] + 127) // 128) * 128
        if len(s) >= 2:
            sub = 8 if itemsize >= 4 else 16
            s[-2] = ((s[-2] + sub - 1) // sub) * sub
        n = 1
        for d in s:
            n *= d
        return n * itemsize

    H4 = 4 * H
    total = 0
    total += 2 * padded((Tc, Bt, F1), 4)     # x block (double-buffered)
    total += padded((F1, H4), 2)             # wih0 (+bias row), bf16
    total += 3 * padded((H, H4), 2)          # whh0, wih1, whh1, bf16
    total += padded((1, H4), 4)              # b1
    total += 2 * padded((Bt, H), 4)          # output block
    total += padded((Tc * Bt, H4), 4)        # xw0 scratch
    total += padded((4, Bt, H), 4)           # carried state
    return min(100 << 20, max(16 << 20, int(total * 1.5) + (2 << 20)))


def lstm_model_forward(x, params, *, time_chunk=None):
    """x: (B, T, F) batch-first float32, same as the PyTorch module."""
    B, T, F = x.shape
    assert F == INPUT_SIZE, F
    H = HIDDEN_SIZE

    # Pad batch to the f32 sublane (8): required by pl.multiple_of(t*Bt, 8) and for
    # unmasked full-vreg stores.
    B_pad = ((B + 7) // 8) * 8
    Bt = _pick_batch_tile(B_pad)
    Tc = _pick_time_chunk(T, time_chunk)
    assert B_pad % 8 == 0 and Bt % 8 == 0 and B_pad % Bt == 0
    assert T % Tc == 0

    # Time-major x with a ones column appended (bias folded into Wih0).
    x_tm = jnp.transpose(x.astype(jnp.float32), (1, 0, 2))          # (T, B, F)
    if B_pad != B:
        x_tm = jnp.pad(x_tm, ((0, 0), (0, B_pad - B), (0, 0)))
    x_aug = jnp.concatenate(
        [x_tm, jnp.ones((T, B_pad, 1), jnp.float32)], axis=-1)      # (T, B_pad, F+1)
    F1 = F + 1

    wih0, whh0, wih1, whh1, b1 = _pack_params(params)

    grid = (B_pad // Bt, T // Tc)                                    # (batch tiles, time chunks)
    full = lambda a: pl.BlockSpec(a.shape, lambda bt, tc: (0,) * a.ndim)

    h2 = pl.pallas_call(
        lstm_kernel,
        out_shape=jax.ShapeDtypeStruct((B_pad, H), jnp.float32),
        grid=grid,
        in_specs=[
            pl.BlockSpec((Tc, Bt, F1), lambda bt, tc: (tc, bt, 0)),  # x streamed per chunk
            full(wih0), full(whh0), full(wih1), full(whh1), full(b1),
        ],
        out_specs=pl.BlockSpec((Bt, H), lambda bt, tc: (bt, 0)),
        scratch_shapes=[
            pltpu.VMEM((Tc * Bt, 4 * H), jnp.float32),               # hoisted projection
            pltpu.VMEM((4, Bt, H), jnp.float32),                     # carried h1,c1,h2,c2
        ],
        compiler_params=pltpu.CompilerParams(
            dimension_semantics=("parallel", "arbitrary"),
            vmem_limit_bytes=_vmem_limit_bytes(Tc, Bt, F1, H),
        ),
    )(x_aug, wih0, whh0, wih1, whh1, b1)

    # Final FC on the last-timestep top-layer hidden state; kept outside the kernel so
    # the kernel output stays lane-dense (H=128) instead of a masked N=1 store.
    return h2[:B] @ params["wfc"] + params["bfc"]


def init_params(key):
    """Deterministic init mimicking PyTorch's U(-1/sqrt(H), 1/sqrt(H)).
    Canonical layout: gates i|f|g|o, weights stored pre-transposed as (in, 4H)."""
    scale = 1.0 / np.sqrt(HIDDEN_SIZE)
    ks = jax.random.split(key, 12)

    def u(k, shape):
        return jax.random.uniform(k, shape, jnp.float32, -scale, scale)

    H, F = HIDDEN_SIZE, INPUT_SIZE
    wih0 = u(ks[0], (F, 4 * H))
    whh0 = u(ks[1], (H, 4 * H))
    b0 = (u(ks[2], (4 * H,)) + u(ks[3], (4 * H,))).reshape(1, 4 * H)   # b_ih + b_hh
    wih1 = u(ks[4], (H, 4 * H))
    whh1 = u(ks[5], (H, 4 * H))
    b1 = (u(ks[6], (4 * H,)) + u(ks[7], (4 * H,))).reshape(1, 4 * H)
    wfc = u(ks[8], (H, OUTPUT_SIZE))
    bfc = u(ks[9], (OUTPUT_SIZE,)).reshape(1, OUTPUT_SIZE)
    return dict(wih0=wih0, whh0=whh0, b0=b0,
                wih1=wih1, whh1=whh1, b1=b1,
                wfc=wfc, bfc=bfc)


def reference_forward(x, params):
    """Pure-JAX f32 reference replicating torch.nn.LSTM(batch_first) + Linear."""
    B, T, F = x.shape
    H = HIDDEN_SIZE

    def cell(x_t, h, c, wih, whh, b):
        gates = x_t @ wih + h @ whh + b
        i = jax.nn.sigmoid(gates[:, 0 * H:1 * H])
        f = jax.nn.sigmoid(gates[:, 1 * H:2 * H])
        g = jnp.tanh(gates[:, 2 * H:3 * H])
        o = jax.nn.sigmoid(gates[:, 3 * H:4 * H])
        c = f * c + i * g
        h = o * jnp.tanh(c)
        return h, c

    h1 = c1 = h2 = c2 = jnp.zeros((B, H), jnp.float32)
    for t in range(T):
        x_t = x[:, t, :]
        h1, c1 = cell(x_t, h1, c1, params["wih0"], params["whh0"], params["b0"])
        h2, c2 = cell(h1, h2, c2, params["wih1"], params["whh1"], params["b1"])
    return h2 @ params["wfc"] + params["bfc"]


if __name__ == "__main__":
    key = jax.random.PRNGKey(0)
    k_x, k_p = jax.random.split(key)

    B, T = 2, 8
    x = jax.random.normal(k_x, (B, T, INPUT_SIZE), jnp.float32)
    params = init_params(k_p)

    # time_chunk=4 -> grid of 2 time chunks: exercises the persistent h/c carry path.
    out = lstm_model_forward(x, params, time_chunk=4)
    out = jax.block_until_ready(out)

    ref = reference_forward(x, params)
    assert out.shape == (B, OUTPUT_SIZE), out.shape
    # Tolerance relaxed vs. the f32 reference because MXU operands are bf16
    # (accumulation and elementwise math remain f32).
    np.testing.assert_allclose(np.asarray(out), np.asarray(ref), rtol=1e-2, atol=1e-2)

    print("KERNEL_OK")
</pallas_src>

<mosaic_0001>
module attributes {stable_mosaic.version = 11 : i64} {
  func.func @lstm_kernel(%arg0: i32, %arg1: i32, %arg2: memref<4x8x15xf32, #tpu.memory_space<vmem>>, %arg3: memref<15x512xbf16, #tpu.memory_space<vmem>>, %arg4: memref<128x512xbf16, #tpu.memory_space<vmem>>, %arg5: memref<128x512xbf16, #tpu.memory_space<vmem>>, %arg6: memref<128x512xbf16, #tpu.memory_space<vmem>>, %arg7: memref<1x512xf32, #tpu.memory_space<vmem>>, %arg8: memref<8x128xf32, #tpu.memory_space<vmem>>, %arg9: memref<32x512xf32, #tpu.memory_space<vmem>>, %arg10: memref<4x8x128xf32, #tpu.memory_space<vmem>>) attributes {dimension_semantics = [#tpu.dimension_semantics<parallel>, #tpu.dimension_semantics<arbitrary>], iteration_bounds = array<i64: 1, 2>, scalar_prefetch = 0 : i64, scratch_operands = 2 : i64, tpu.core_type = #tpu.core_type<tc>, window_params = [{transform_indices = @transform_0, window_bounds = array<i64: 4, 8, 15>}, {pipeline_mode = #tpu.pipeline_mode<synchronous>, transform_indices = @transform_1, window_bounds = array<i64: 15, 512>}, {pipeline_mode = #tpu.pipeline_mode<synchronous>, transform_indices = @transform_2, window_bounds = array<i64: 128, 512>}, {pipeline_mode = #tpu.pipeline_mode<synchronous>, transform_indices = @transform_3, window_bounds = array<i64: 128, 512>}, {pipeline_mode = #tpu.pipeline_mode<synchronous>, transform_indices = @transform_4, window_bounds = array<i64: 128, 512>}, {pipeline_mode = #tpu.pipeline_mode<synchronous>, transform_indices = @transform_5, window_bounds = array<i64: 1, 512>}, {transform_indices = @transform_6, window_bounds = array<i64: 8, 128>}]} {
    %c0_i32 = arith.constant 0 : i32
    %0 = arith.cmpi eq, %arg1, %c0_i32 : i32
    %1 = arith.extui %0 : i1 to i32
    %c0_i32_0 = arith.constant 0 : i32
    %2 = arith.cmpi ne, %1, %c0_i32_0 : i32
    scf.if %2 {
      %cst_92 = arith.constant 0.000000e+00 : f32
      %217 = vector.broadcast %cst_92 : f32 to vector<4x8x128xf32>
      %c0_93 = arith.constant 0 : index
      %c0_94 = arith.constant 0 : index
      %c0_95 = arith.constant 0 : index
      %218 = vector.load %arg10[%c0_93, %c0_94, %c0_95] : memref<4x8x128xf32, #tpu.memory_space<vmem>>, vector<4x8x128xf32>
      tpu.vector_store %arg10[%c0_93, %c0_94, %c0_95], %217 {strides = array<i32>} : memref<4x8x128xf32, #tpu.memory_space<vmem>>, vector<4x8x128xf32>,
    } else {
    }
    %c0 = arith.constant 0 : index
    %c0_1 = arith.constant 0 : index
    %c0_2 = arith.constant 0 : index
    %3 = vector.load %arg2[%c0, %c0_1, %c0_2] : memref<4x8x15xf32, #tpu.memory_space<vmem>>, vector<4x8x15xf32>
    %4 = vector.shape_cast %3 : vector<4x8x15xf32> to vector<32x15xf32>
    %5 = arith.truncf %4 : vector<32x15xf32> to vector<32x15xbf16>
    %c0_3 = arith.constant 0 : index
    %c0_4 = arith.constant 0 : index
    %6 = vector.load %arg3[%c0_3, %c0_4] : memref<15x512xbf16, #tpu.memory_space<vmem>>, vector<15x512xbf16>
    %cst = arith.constant dense<0.000000e+00> : vector<32x512xf32>
    %7 = tpu.matmul %5, %6, %cst {dimension_numbers = #tpu.dot_dimension_numbers<[1], [0], [0], [1], [0, 0, 1, 1], [], []>} : vector<32x15xbf16>, vector<15x512xbf16>, vector<32x512xf32> -> vector<32x512xf32>
    %c0_5 = arith.constant 0 : index
    %c0_6 = arith.constant 0 : index
    %8 = vector.load %arg9[%c0_5, %c0_6] : memref<32x512xf32, #tpu.memory_space<vmem>>, vector<32x512xf32>
    tpu.vector_store %arg9[%c0_5, %c0_6], %7 {strides = array<i32>} : memref<32x512xf32, #tpu.memory_space<vmem>>, vector<32x512xf32>,
    %c0_7 = arith.constant 0 : index
    %c0_8 = arith.constant 0 : index
    %9 = vector.load %arg7[%c0_7, %c0_8] : memref<1x512xf32, #tpu.memory_space<vmem>>, vector<1x512xf32>
    %10 = vector.shape_cast %9 : vector<1x512xf32> to vector<1x512xf32>
    %11 = vector.broadcast %10 : vector<1x512xf32> to vector<8x512xf32>
    %c0_9 = arith.constant 0 : index
    %c0_10 = arith.constant 0 : index
    %c0_11 = arith.constant 0 : index
    %12 = vector.load %arg10[%c0_9, %c0_10, %c0_11] : memref<4x8x128xf32, #tpu.memory_space<vmem>>, vector<1x8x128xf32>
    %13 = vector.shape_cast %12 : vector<1x8x128xf32> to vector<8x128xf32>
    %c1 = arith.constant 1 : index
    %c0_12 = arith.constant 0 : index
    %c0_13 = arith.constant 0 : index
    %14 = vector.load %arg10[%c1, %c0_12, %c0_13] : memref<4x8x128xf32, #tpu.memory_space<vmem>>, vector<1x8x128xf32>
    %15 = vector.shape_cast %14 : vector<1x8x128xf32> to vector<8x128xf32>
    %c2 = arith.constant 2 : index
    %c0_14 = arith.constant 0 : index
    %c0_15 = arith.constant 0 : index
    %16 = vector.load %arg10[%c2, %c0_14, %c0_15] : memref<4x8x128xf32, #tpu.memory_space<vmem>>, vector<1x8x128xf32>
    %17 = vector.shape_cast %16 : vector<1x8x128xf32> to vector<8x128xf32>
    %c3 = arith.constant 3 : index
    %c0_16 = arith.constant 0 : index
    %c0_17 = arith.constant 0 : index
    %18 = vector.load %arg10[%c3, %c0_16, %c0_17] : memref<4x8x128xf32, #tpu.memory_space<vmem>>, vector<1x8x128xf32>
    %19 = vector.shape_cast %18 : vector<1x8x128xf32> to vector<8x128xf32>
    %c0_i32_18 = arith.constant 0 : i32
    %c8_i32 = arith.constant 8 : i32
    %20 = arith.muli %c0_i32_18, %c8_i32 : i32
    %21 = tpu.assume_multiple %20, 8 : i32
    %22 = arith.truncf %17 : vector<8x128xf32> to vector<8x128xbf16>
    %c0_19 = arith.constant 0 : index
    %c0_20 = arith.constant 0 : index
    %23 = vector.load %arg6[%c0_19, %c0_20] : memref<128x512xbf16, #tpu.memory_space<vmem>>, vector<128x512xbf16>
    %cst_21 = arith.constant dense<0.000000e+00> : vector<8x512xf32>
    %24 = tpu.matmul %22, %23, %cst_21 {dimension_numbers = #tpu.dot_dimension_numbers<[1], [0], [0], [1], [0, 0, 1, 1], [], []>} : vector<8x128xbf16>, vector<128x512xbf16>, vector<8x512xf32> -> vector<8x512xf32>
    %25 = arith.addf %24, %11 : vector<8x512xf32>
    %26 = arith.index_cast %21 : i32 to index
    %c0_22 = arith.constant 0 : index
    %27 = vector.load %arg9[%26, %c0_22] : memref<32x512xf32, #tpu.memory_space<vmem>>, vector<8x512xf32>
    %28 = arith.truncf %13 : vector<8x128xf32> to vector<8x128xbf16>
    %c0_23 = arith.constant 0 : index
    %c0_24 = arith.constant 0 : index
    %29 = vector.load %arg4[%c0_23, %c0_24] : memref<128x512xbf16, #tpu.memory_space<vmem>>, vector<128x512xbf16>
    %cst_25 = arith.constant dense<0.000000e+00> : vector<8x512xf32>
    %30 = tpu.matmul %28, %29, %cst_25 {dimension_numbers = #tpu.dot_dimension_numbers<[1], [0], [0], [1], [0, 0, 1, 1], [], []>} : vector<8x128xbf16>, vector<128x512xbf16>, vector<8x512xf32> -> vector<8x512xf32>
    %31 = arith.addf %27, %30 : vector<8x512xf32>
    %32 = math.tanh %31 : vector<8x512xf32>
    %33 = vector.extract_strided_slice %32 {offsets = [0, 0], sizes = [8, 384], strides = [1, 1]} : vector<8x512xf32> to vector<8x384xf32>
    %cst_26 = arith.constant 5.000000e-01 : f32
    %34 = vector.broadcast %cst_26 : f32 to vector<8x384xf32>
    %35 = arith.mulf %33, %34 : vector<8x384xf32>
    %cst_27 = arith.constant 5.000000e-01 : f32
    %36 = vector.broadcast %cst_27 : f32 to vector<8x384xf32>
    %37 = arith.addf %35, %36 : vector<8x384xf32>
    %38 = vector.extract_strided_slice %37 {offsets = [0, 0], sizes = [8, 128], strides = [1, 1]} : vector<8x384xf32> to vector<8x128xf32>
    %39 = vector.extract_strided_slice %37 {offsets = [0, 128], sizes = [8, 128], strides = [1, 1]} : vector<8x384xf32> to vector<8x128xf32>
    %40 = vector.extract_strided_slice %37 {offsets = [0, 256], sizes = [8, 128], strides = [1, 1]} : vector<8x384xf32> to vector<8x128xf32>
    %41 = vector.extract_strided_slice %32 {offsets = [0, 384], sizes = [8, 128], strides = [1, 1]} : vector<8x512xf32> to vector<8x128xf32>
    %42 = arith.mulf %39, %15 : vector<8x128xf32>
    %43 = arith.mulf %38, %41 : vector<8x128xf32>
    %44 = arith.addf %42, %43 : vector<8x128xf32>
    %45 = math.tanh %44 : vector<8x128xf32>
    %46 = arith.mulf %40, %45 : vector<8x128xf32>
    %47 = arith.truncf %46 : vector<8x128xf32> to vector<8x128xbf16>
    %c0_28 = arith.constant 0 : index
    %c0_29 = arith.constant 0 : index
    %48 = vector.load %arg5[%c0_28, %c0_29] : memref<128x512xbf16, #tpu.memory_space<vmem>>, vector<128x512xbf16>
    %cst_30 = arith.constant dense<0.000000e+00> : vector<8x512xf32>
    %49 = tpu.matmul %47, %48, %cst_30 {dimension_numbers = #tpu.dot_dimension_numbers<[1], [0], [0], [1], [0, 0, 1, 1], [], []>} : vector<8x128xbf16>, vector<128x512xbf16>, vector<8x512xf32> -> vector<8x512xf32>
    %50 = arith.addf %49, %25 : vector<8x512xf32>
    %51 = math.tanh %50 : vector<8x512xf32>
    %52 = vector.extract_strided_slice %51 {offsets = [0, 0], sizes = [8, 384], strides = [1, 1]} : vector<8x512xf32> to vector<8x384xf32>
    %cst_31 = arith.constant 5.000000e-01 : f32
    %53 = vector.broadcast %cst_31 : f32 to vector<8x384xf32>
    %54 = arith.mulf %52, %53 : vector<8x384xf32>
    %cst_32 = arith.constant 5.000000e-01 : f32
    %55 = vector.broadcast %cst_32 : f32 to vector<8x384xf32>
    %56 = arith.addf %54, %55 : vector<8x384xf32>
    %57 = vector.extract_strided_slice %56 {offsets = [0, 0], sizes = [8, 128], strides = [1, 1]} : vector<8x384xf32> to vector<8x128xf32>
    %58 = vector.extract_strided_slice %56 {offsets = [0, 128], sizes = [8, 128], strides = [1, 1]} : vector<8x384xf32> to vector<8x128xf32>
    %59 = vector.extract_strided_slice %56 {offsets = [0, 256], sizes = [8, 128], strides = [1, 1]} : vector<8x384xf32> to vector<8x128xf32>
    %60 = vector.extract_strided_slice %51 {offsets = [0, 384], sizes = [8, 128], strides = [1, 1]} : vector<8x512xf32> to vector<8x128xf32>
    %61 = arith.mulf %58, %19 : vector<8x128xf32>
    %62 = arith.mulf %57, %60 : vector<8x128xf32>
    %63 = arith.addf %61, %62 : vector<8x128xf32>
    %64 = math.tanh %63 : vector<8x128xf32>
    %65 = arith.mulf %59, %64 : vector<8x128xf32>
    %c1_i32 = arith.constant 1 : i32
    %c8_i32_33 = arith.constant 8 : i32
    %66 = arith.muli %c1_i32, %c8_i32_33 : i32
    %67 = tpu.assume_multiple %66, 8 : i32
    %68 = arith.truncf %65 : vector<8x128xf32> to vector<8x128xbf16>
    %c0_34 = arith.constant 0 : index
    %c0_35 = arith.constant 0 : index
    %69 = vector.load %arg6[%c0_34, %c0_35] : memref<128x512xbf16, #tpu.memory_space<vmem>>, vector<128x512xbf16>
    %cst_36 = arith.constant dense<0.000000e+00> : vector<8x512xf32>
    %70 = tpu.matmul %68, %69, %cst_36 {dimension_numbers = #tpu.dot_dimension_numbers<[1], [0], [0], [1], [0, 0, 1, 1], [], []>} : vector<8x128xbf16>, vector<128x512xbf16>, vector<8x512xf32> -> vector<8x512xf32>
    %71 = arith.addf %70, %11 : vector<8x512xf32>
    %72 = arith.index_cast %67 : i32 to index
    %c0_37 = arith.constant 0 : index
    %73 = vector.load %arg9[%72, %c0_37] : memref<32x512xf32, #tpu.memory_space<vmem>>, vector<8x512xf32>
    %74 = arith.truncf %46 : vector<8x128xf32> to vector<8x128xbf16>
    %c0_38 = arith.constant 0 : index
    %c0_39 = arith.constant 0 : index
    %75 = vector.load %arg4[%c0_38, %c0_39] : memref<128x512xbf16, #tpu.memory_space<vmem>>, vector<128x512xbf16>
    %cst_40 = arith.constant dense<0.000000e+00> : vector<8x512xf32>
    %76 = tpu.matmul %74, %75, %cst_40 {dimension_numbers = #tpu.dot_dimension_numbers<[1], [0], [0], [1], [0, 0, 1, 1], [], []>} : vector<8x128xbf16>, vector<128x512xbf16>, vector<8x512xf32> -> vector<8x512xf32>
    %77 = arith.addf %73, %76 : vector<8x512xf32>
    %78 = math.tanh %77 : vector<8x512xf32>
    %79 = vector.extract_strided_slice %78 {offsets = [0, 0], sizes = [8, 384], strides = [1, 1]} : vector<8x512xf32> to vector<8x384xf32>
    %cst_41 = arith.constant 5.000000e-01 : f32
    %80 = vector.broadcast %cst_41 : f32 to vector<8x384xf32>
    %81 = arith.mulf %79, %80 : vector<8x384xf32>
    %cst_42 = arith.constant 5.000000e-01 : f32
    %82 = vector.broadcast %cst_42 : f32 to vector<8x384xf32>
    %83 = arith.addf %81, %82 : vector<8x384xf32>
    %84 = vector.extract_strided_slice %83 {offsets = [0, 0], sizes = [8, 128], strides = [1, 1]} : vector<8x384xf32> to vector<8x128xf32>
    %85 = vector.extract_strided_slice %83 {offsets = [0, 128], sizes = [8, 128], strides = [1, 1]} : vector<8x384xf32> to vector<8x128xf32>
    %86 = vector.extract_strided_slice %83 {offsets = [0, 256], sizes = [8, 128], strides = [1, 1]} : vector<8x384xf32> to vector<8x128xf32>
    %87 = vector.extract_strided_slice %78 {offsets = [0, 384], sizes = [8, 128], strides = [1, 1]} : vector<8x512xf32> to vector<8x128xf32>
    %88 = arith.mulf %85, %44 : vector<8x128xf32>
    %89 = arith.mulf %84, %87 : vector<8x128xf32>
    %90 = arith.addf %88, %89 : vector<8x128xf32>
    %91 = math.tanh %90 : vector<8x128xf32>
    %92 = arith.mulf %86, %91 : vector<8x128xf32>
    %93 = arith.truncf %92 : vector<8x128xf32> to vector<8x128xbf16>
    %c0_43 = arith.constant 0 : index
    %c0_44 = arith.constant 0 : index
    %94 = vector.load %arg5[%c0_43, %c0_44] : memref<128x512xbf16, #tpu.memory_space<vmem>>, vector<128x512xbf16>
    %cst_45 = arith.constant dense<0.000000e+00> : vector<8x512xf32>
    %95 = tpu.matmul %93, %94, %cst_45 {dimension_numbers = #tpu.dot_dimension_numbers<[1], [0], [0], [1], [0, 0, 1, 1], [], []>} : vector<8x128xbf16>, vector<128x512xbf16>, vector<8x512xf32> -> vector<8x512xf32>
    %96 = arith.addf %95, %71 : vector<8x512xf32>
    %97 = math.tanh %96 : vector<8x512xf32>
    %98 = vector.extract_strided_slice %97 {offsets = [0, 0], sizes = [8, 384], strides = [1, 1]} : vector<8x512xf32> to vector<8x384xf32>
    %cst_46 = arith.constant 5.000000e-01 : f32
    %99 = vector.broadcast %cst_46 : f32 to vector<8x384xf32>
    %100 = arith.mulf %98, %99 : vector<8x384xf32>
    %cst_47 = arith.constant 5.000000e-01 : f32
    %101 = vector.broadcast %cst_47 : f32 to vector<8x384xf32>
    %102 = arith.addf %100, %101 : vector<8x384xf32>
    %103 = vector.extract_strided_slice %102 {offsets = [0, 0], sizes = [8, 128], strides = [1, 1]} : vector<8x384xf32> to vector<8x128xf32>
    %104 = vector.extract_strided_slice %102 {offsets = [0, 128], sizes = [8, 128], strides = [1, 1]} : vector<8x384xf32> to vector<8x128xf32>
    %105 = vector.extract_strided_slice %102 {offsets = [0, 256], sizes = [8, 128], strides = [1, 1]} : vector<8x384xf32> to vector<8x128xf32>
    %106 = vector.extract_strided_slice %97 {offsets = [0, 384], sizes = [8, 128], strides = [1, 1]} : vector<8x512xf32> to vector<8x128xf32>
    %107 = arith.mulf %104, %63 : vector<8x128xf32>
    %108 = arith.mulf %103, %106 : vector<8x128xf32>
    %109 = arith.addf %107, %108 : vector<8x128xf32>
    %110 = math.tanh %109 : vector<8x128xf32>
    %111 = arith.mulf %105, %110 : vector<8x128xf32>
    %c2_i32 = arith.constant 2 : i32
    %c8_i32_48 = arith.constant 8 : i32
    %112 = arith.muli %c2_i32, %c8_i32_48 : i32
    %113 = tpu.assume_multiple %112, 8 : i32
    %114 = arith.truncf %111 : vector<8x128xf32> to vector<8x128xbf16>
    %c0_49 = arith.constant 0 : index
    %c0_50 = arith.constant 0 : index
    %115 = vector.load %arg6[%c0_49, %c0_50] : memref<128x512xbf16, #tpu.memory_space<vmem>>, vector<128x512xbf16>
    %cst_51 = arith.constant dense<0.000000e+00> : vector<8x512xf32>
    %116 = tpu.matmul %114, %115, %cst_51 {dimension_numbers = #tpu.dot_dimension_numbers<[1], [0], [0], [1], [0, 0, 1, 1], [], []>} : vector<8x128xbf16>, vector<128x512xbf16>, vector<8x512xf32> -> vector<8x512xf32>
    %117 = arith.addf %116, %11 : vector<8x512xf32>
    %118 = arith.index_cast %113 : i32 to index
    %c0_52 = arith.constant 0 : index
    %119 = vector.load %arg9[%118, %c0_52] : memref<32x512xf32, #tpu.memory_space<vmem>>, vector<8x512xf32>
    %120 = arith.truncf %92 : vector<8x128xf32> to vector<8x128xbf16>
    %c0_53 = arith.constant 0 : index
    %c0_54 = arith.constant 0 : index
    %121 = vector.load %arg4[%c0_53, %c0_54] : memref<128x512xbf16, #tpu.memory_space<vmem>>, vector<128x512xbf16>
    %cst_55 = arith.constant dense<0.000000e+00> : vector<8x512xf32>
    %122 = tpu.matmul %120, %121, %cst_55 {dimension_numbers = #tpu.dot_dimension_numbers<[1], [0], [0], [1], [0, 0, 1, 1], [], []>} : vector<8x128xbf16>, vector<128x512xbf16>, vector<8x512xf32> -> vector<8x512xf32>
    %123 = arith.addf %119, %122 : vector<8x512xf32>
    %124 = math.tanh %123 : vector<8x512xf32>
    %125 = vector.extract_strided_slice %124 {offsets = [0, 0], sizes = [8, 384], strides = [1, 1]} : vector<8x512xf32> to vector<8x384xf32>
    %cst_56 = arith.constant 5.000000e-01 : f32
    %126 = vector.broadcast %cst_56 : f32 to vector<8x384xf32>
    %127 = arith.mulf %125, %126 : vector<8x384xf32>
    %cst_57 = arith.constant 5.000000e-01 : f32
    %128 = vector.broadcast %cst_57 : f32 to vector<8x384xf32>
    %129 = arith.addf %127, %128 : vector<8x384xf32>
    %130 = vector.extract_strided_slice %129 {offsets = [0, 0], sizes = [8, 128], strides = [1, 1]} : vector<8x384xf32> to vector<8x128xf32>
    %131 = vector.extract_strided_slice %129 {offsets = [0, 128], sizes = [8, 128], strides = [1, 1]} : vector<8x384xf32> to vector<8x128xf32>
    %132 = vector.extract_strided_slice %129 {offsets = [0, 256], sizes = [8, 128], strides = [1, 1]} : vector<8x384xf32> to vector<8x128xf32>
    %133 = vector.extract_strided_slice %124 {offsets = [0, 384], sizes = [8, 128], strides = [1, 1]} : vector<8x512xf32> to vector<8x128xf32>
    %134 = arith.mulf %131, %90 : vector<8x128xf32>
    %135 = arith.mulf %130, %133 : vector<8x128xf32>
    %136 = arith.addf %134, %135 : vector<8x128xf32>
    %137 = math.tanh %136 : vector<8x128xf32>
    %138 = arith.mulf %132, %137 : vector<8x128xf32>
    %139 = arith.truncf %138 : vector<8x128xf32> to vector<8x128xbf16>
    %c0_58 = arith.constant 0 : index
    %c0_59 = arith.constant 0 : index
    %140 = vector.load %arg5[%c0_58, %c0_59] : memref<128x512xbf16, #tpu.memory_space<vmem>>, vector<128x512xbf16>
    %cst_60 = arith.constant dense<0.000000e+00> : vector<8x512xf32>
    %141 = tpu.matmul %139, %140, %cst_60 {dimension_numbers = #tpu.dot_dimension_numbers<[1], [0], [0], [1], [0, 0, 1, 1], [], []>} : vector<8x128xbf16>, vector<128x512xbf16>, vector<8x512xf32> -> vector<8x512xf32>
    %142 = arith.addf %141, %117 : vector<8x512xf32>
    %143 = math.tanh %142 : vector<8x512xf32>
    %144 = vector.extract_strided_slice %143 {offsets = [0, 0], sizes = [8, 384], strides = [1, 1]} : vector<8x512xf32> to vector<8x384xf32>
    %cst_61 = arith.constant 5.000000e-01 : f32
    %145 = vector.broadcast %cst_61 : f32 to vector<8x384xf32>
    %146 = arith.mulf %144, %145 : vector<8x384xf32>
    %cst_62 = arith.constant 5.000000e-01 : f32
    %147 = vector.broadcast %cst_62 : f32 to vector<8x384xf32>
    %148 = arith.addf %146, %147 : vector<8x384xf32>
    %149 = vector.extract_strided_slice %148 {offsets = [0, 0], sizes = [8, 128], strides = [1, 1]} : vector<8x384xf32> to vector<8x128xf32>
    %150 = vector.extract_strided_slice %148 {offsets = [0, 128], sizes = [8, 128], strides = [1, 1]} : vector<8x384xf32> to vector<8x128xf32>
    %151 = vector.extract_strided_slice %148 {offsets = [0, 256], sizes = [8, 128], strides = [1, 1]} : vector<8x384xf32> to vector<8x128xf32>
    %152 = vector.extract_strided_slice %143 {offsets = [0, 384], sizes = [8, 128], strides = [1, 1]} : vector<8x512xf32> to vector<8x128xf32>
    %153 = arith.mulf %150, %109 : vector<8x128xf32>
    %154 = arith.mulf %149, %152 : vector<8x128xf32>
    %155 = arith.addf %153, %154 : vector<8x128xf32>
    %156 = math.tanh %155 : vector<8x128xf32>
    %157 = arith.mulf %151, %156 : vector<8x128xf32>
    %c3_i32 = arith.constant 3 : i32
    %c8_i32_63 = arith.constant 8 : i32
    %158 = arith.muli %c3_i32, %c8_i32_63 : i32
    %159 = tpu.assume_multiple %158, 8 : i32
    %160 = arith.truncf %157 : vector<8x128xf32> to vector<8x128xbf16>
    %c0_64 = arith.constant 0 : index
    %c0_65 = arith.constant 0 : index
    %161 = vector.load %arg6[%c0_64, %c0_65] : memref<128x512xbf16, #tpu.memory_space<vmem>>, vector<128x512xbf16>
    %cst_66 = arith.constant dense<0.000000e+00> : vector<8x512xf32>
    %162 = tpu.matmul %160, %161, %cst_66 {dimension_numbers = #tpu.dot_dimension_numbers<[1], [0], [0], [1], [0, 0, 1, 1], [], []>} : vector<8x128xbf16>, vector<128x512xbf16>, vector<8x512xf32> -> vector<8x512xf32>
    %163 = arith.addf %162, %11 : vector<8x512xf32>
    %164 = arith.index_cast %159 : i32 to index
    %c0_67 = arith.constant 0 : index
    %165 = vector.load %arg9[%164, %c0_67] : memref<32x512xf32, #tpu.memory_space<vmem>>, vector<8x512xf32>
    %166 = arith.truncf %138 : vector<8x128xf32> to vector<8x128xbf16>
    %c0_68 = arith.constant 0 : index
    %c0_69 = arith.constant 0 : index
    %167 = vector.load %arg4[%c0_68, %c0_69] : memref<128x512xbf16, #tpu.memory_space<vmem>>, vector<128x512xbf16>
    %cst_70 = arith.constant dense<0.000000e+00> : vector<8x512xf32>
    %168 = tpu.matmul %166, %167, %cst_70 {dimension_numbers = #tpu.dot_dimension_numbers<[1], [0], [0], [1], [0, 0, 1, 1], [], []>} : vector<8x128xbf16>, vector<128x512xbf16>, vector<8x512xf32> -> vector<8x512xf32>
    %169 = arith.addf %165, %168 : vector<8x512xf32>
    %170 = math.tanh %169 : vector<8x512xf32>
    %171 = vector.extract_strided_slice %170 {offsets = [0, 0], sizes = [8, 384], strides = [1, 1]} : vector<8x512xf32> to vector<8x384xf32>
    %cst_71 = arith.constant 5.000000e-01 : f32
    %172 = vector.broadcast %cst_71 : f32 to vector<8x384xf32>
    %173 = arith.mulf %171, %172 : vector<8x384xf32>
    %cst_72 = arith.constant 5.000000e-01 : f32
    %174 = vector.broadcast %cst_72 : f32 to vector<8x384xf32>
    %175 = arith.addf %173, %174 : vector<8x384xf32>
    %176 = vector.extract_strided_slice %175 {offsets = [0, 0], sizes = [8, 128], strides = [1, 1]} : vector<8x384xf32> to vector<8x128xf32>
    %177 = vector.extract_strided_slice %175 {offsets = [0, 128], sizes = [8, 128], strides = [1, 1]} : vector<8x384xf32> to vector<8x128xf32>
    %178 = vector.extract_strided_slice %175 {offsets = [0, 256], sizes = [8, 128], strides = [1, 1]} : vector<8x384xf32> to vector<8x128xf32>
    %179 = vector.extract_strided_slice %170 {offsets = [0, 384], sizes = [8, 128], strides = [1, 1]} : vector<8x512xf32> to vector<8x128xf32>
    %180 = arith.mulf %177, %136 : vector<8x128xf32>
    %181 = arith.mulf %176, %179 : vector<8x128xf32>
    %182 = arith.addf %180, %181 : vector<8x128xf32>
    %183 = math.tanh %182 : vector<8x128xf32>
    %184 = arith.mulf %178, %183 : vector<8x128xf32>
    %185 = arith.truncf %184 : vector<8x128xf32> to vector<8x128xbf16>
    %c0_73 = arith.constant 0 : index
    %c0_74 = arith.constant 0 : index
    %186 = vector.load %arg5[%c0_73, %c0_74] : memref<128x512xbf16, #tpu.memory_space<vmem>>, vector<128x512xbf16>
    %cst_75 = arith.constant dense<0.000000e+00> : vector<8x512xf32>
    %187 = tpu.matmul %185, %186, %cst_75 {dimension_numbers = #tpu.dot_dimension_numbers<[1], [0], [0], [1], [0, 0, 1, 1], [], []>} : vector<8x128xbf16>, vector<128x512xbf16>, vector<8x512xf32> -> vector<8x512xf32>
    %188 = arith.addf %187, %163 : vector<8x512xf32>
    %189 = math.tanh %188 : vector<8x512xf32>
    %190 = vector.extract_strided_slice %189 {offsets = [0, 0], sizes = [8, 384], strides = [1, 1]} : vector<8x512xf32> to vector<8x384xf32>
    %cst_76 = arith.constant 5.000000e-01 : f32
    %191 = vector.broadcast %cst_76 : f32 to vector<8x384xf32>
    %192 = arith.mulf %190, %191 : vector<8x384xf32>
    %cst_77 = arith.constant 5.000000e-01 : f32
    %193 = vector.broadcast %cst_77 : f32 to vector<8x384xf32>
    %194 = arith.addf %192, %193 : vector<8x384xf32>
    %195 = vector.extract_strided_slice %194 {offsets = [0, 0], sizes = [8, 128], strides = [1, 1]} : vector<8x384xf32> to vector<8x128xf32>
    %196 = vector.extract_strided_slice %194 {offsets = [0, 128], sizes = [8, 128], strides = [1, 1]} : vector<8x384xf32> to vector<8x128xf32>
    %197 = vector.extract_strided_slice %194 {offsets = [0, 256], sizes = [8, 128], strides = [1, 1]} : vector<8x384xf32> to vector<8x128xf32>
    %198 = vector.extract_strided_slice %189 {offsets = [0, 384], sizes = [8, 128], strides = [1, 1]} : vector<8x512xf32> to vector<8x128xf32>
    %199 = arith.mulf %196, %155 : vector<8x128xf32>
    %200 = arith.mulf %195, %198 : vector<8x128xf32>
    %201 = arith.addf %199, %200 : vector<8x128xf32>
    %202 = math.tanh %201 : vector<8x128xf32>
    %203 = arith.mulf %197, %202 : vector<8x128xf32>
    %c4_i32 = arith.constant 4 : i32
    %c0_78 = arith.constant 0 : index
    %c0_79 = arith.constant 0 : index
    %c0_80 = arith.constant 0 : index
    %204 = vector.load %arg10[%c0_78, %c0_79, %c0_80] : memref<4x8x128xf32, #tpu.memory_space<vmem>>, vector<1x8x128xf32>
    %205 = vector.shape_cast %204 : vector<1x8x128xf32> to vector<8x128xf32>
    %206 = vector.shape_cast %184 : vector<8x128xf32> to vector<1x8x128xf32>
    tpu.vector_store %arg10[%c0_78, %c0_79, %c0_80], %206 {strides = array<i32>} : memref<4x8x128xf32, #tpu.memory_space<vmem>>, vector<1x8x128xf32>,
    %c1_81 = arith.constant 1 : index
    %c0_82 = arith.constant 0 : index
    %c0_83 = arith.constant 0 : index
    %207 = vector.load %arg10[%c1_81, %c0_82, %c0_83] : memref<4x8x128xf32, #tpu.memory_space<vmem>>, vector<1x8x128xf32>
    %208 = vector.shape_cast %207 : vector<1x8x128xf32> to vector<8x128xf32>
    %209 = vector.shape_cast %182 : vector<8x128xf32> to vector<1x8x128xf32>
    tpu.vector_store %arg10[%c1_81, %c0_82, %c0_83], %209 {strides = array<i32>} : memref<4x8x128xf32, #tpu.memory_space<vmem>>, vector<1x8x128xf32>,
    %c2_84 = arith.constant 2 : index
    %c0_85 = arith.constant 0 : index
    %c0_86 = arith.constant 0 : index
    %210 = vector.load %arg10[%c2_84, %c0_85, %c0_86] : memref<4x8x128xf32, #tpu.memory_space<vmem>>, vector<1x8x128xf32>
    %211 = vector.shape_cast %210 : vector<1x8x128xf32> to vector<8x128xf32>
    %212 = vector.shape_cast %203 : vector<8x128xf32> to vector<1x8x128xf32>
    tpu.vector_store %arg10[%c2_84, %c0_85, %c0_86], %212 {strides = array<i32>} : memref<4x8x128xf32, #tpu.memory_space<vmem>>, vector<1x8x128xf32>,
    %c3_87 = arith.constant 3 : index
    %c0_88 = arith.constant 0 : index
    %c0_89 = arith.constant 0 : index
    %213 = vector.load %arg10[%c3_87, %c0_88, %c0_89] : memref<4x8x128xf32, #tpu.memory_space<vmem>>, vector<1x8x128xf32>
    %214 = vector.shape_cast %213 : vector<1x8x128xf32> to vector<8x128xf32>
    %215 = vector.shape_cast %201 : vector<8x128xf32> to vector<1x8x128xf32>
    tpu.vector_store %arg10[%c3_87, %c0_88, %c0_89], %215 {strides = array<i32>} : memref<4x8x128xf32, #tpu.memory_space<vmem>>, vector<1x8x128xf32>,
    %c0_90 = arith.constant 0 : index
    %c0_91 = arith.constant 0 : index
    %216 = vector.load %arg8[%c0_90, %c0_91] : memref<8x128xf32, #tpu.memory_space<vmem>>, vector<8x128xf32>
    tpu.vector_store %arg8[%c0_90, %c0_91], %203 {strides = array<i32>} : memref<8x128xf32, #tpu.memory_space<vmem>>, vector<8x128xf32>,
    return
  }
  func.func @transform_0(%arg0: i32, %arg1: i32) -> (i32, i32, i32) {
    %c0_i32 = arith.constant 0 : i32
    %c0_i32_0 = arith.constant 0 : i32
    return %arg1, %arg0, %c0_i32 : i32, i32, i32
  }
  func.func @transform_1(%arg0: i32, %arg1: i32) -> (i32, i32) {
    %c0_i32 = arith.constant 0 : i32
    %c0_i32_0 = arith.constant 0 : i32
    %c0_i32_1 = arith.constant 0 : i32
    return %c0_i32, %c0_i32_0 : i32, i32
  }
  func.func @transform_2(%arg0: i32, %arg1: i32) -> (i32, i32) {
    %c0_i32 = arith.constant 0 : i32
    %c0_i32_0 = arith.constant 0 : i32
    %c0_i32_1 = arith.constant 0 : i32
    return %c0_i32, %c0_i32_0 : i32, i32
  }
  func.func @transform_3(%arg0: i32, %arg1: i32) -> (i32, i32) {
    %c0_i32 = arith.constant 0 : i32
    %c0_i32_0 = arith.constant 0 : i32
    %c0_i32_1 = arith.constant 0 : i32
    return %c0_i32, %c0_i32_0 : i32, i32
  }
  func.func @transform_4(%arg0: i32, %arg1: i32) -> (i32, i32) {
    %c0_i32 = arith.constant 0 : i32
    %c0_i32_0 = arith.constant 0 : i32
    %c0_i32_1 = arith.constant 0 : i32
    return %c0_i32, %c0_i32_0 : i32, i32
  }
  func.func @transform_5(%arg0: i32, %arg1: i32) -> (i32, i32) {
    %c0_i32 = arith.constant 0 : i32
    %c0_i32_0 = arith.constant 0 : i32
    %c0_i32_1 = arith.constant 0 : i32
    return %c0_i32, %c0_i32_0 : i32, i32
  }
  func.func @transform_6(%arg0: i32, %arg1: i32) -> (i32, i32) {
    %c0_i32 = arith.constant 0 : i32
    %c0_i32_0 = arith.constant 0 : i32
    return %arg0, %c0_i32 : i32, i32
  }
}

</mosaic_0001>

<bundles_post_ra>
// kernel: tpu_custom_call.1
= control target key start
LH: loop header
LB: loop body
LE: loop exit
PB: predicated region body
PF: predicated region fallthrough
CT: control target
= control target key end

     0   :  { %s3910_s0 = inlined_call_operand.hbm [shape: f32[8,8,15], index: 0, kind: input, shape index: {}]   ;;  %s3911_s1 = inlined_call_operand.hbm [shape: bf16[15,512], index: 1, kind: input, shape index: {}]   ;;  %s3912_s2 = inlined_call_operand.hbm [shape: bf16[128,512], index: 2, kind: input, shape index: {}]   ;;  %s3913_s3 = inlined_call_operand.hbm [shape: bf16[128,512], index: 3, kind: input, shape index: {}]   ;;  %s3914_s4 = inlined_call_operand.hbm [shape: bf16[128,512], index: 4, kind: input, shape index: {}]   ;;  %s3915_s5 = inlined_call_operand.vmem [shape: f32[1,512], index: 5, kind: input, shape index: {}]   ;;  %s3916_s6 = inlined_call_operand.hbm [shape: f32[8,128], index: 6, kind: output, shape index: {}]  }
   0x1   :  { %4061 = sst [smem:[#allocation116_spill]] %s3911_s1 }
   0x2   :  { %11 = vsyncpa [#allocation5], 0 }
   0x3   :  { %13 = vsyncpa [#allocation5 + $0x1], 0 }
   0x4   :  { %14 = vsyncpa [#allocation8], 0 }
   0x5   :  { %15 = vsyncpa [#allocation11], 0 }
   0x6   :  { %16 = vsyncpa [#allocation6], 0  ;;  %s3014_s21 = smov 0   ;;  %s3016_s22 = smov 0  }
   0x7   :  { %s3018_s23 = smov 0   ;;  %s3020_s24 = smov 0  }
   0x8   :  { %s3022_s25 = smov 0   ;;  %s3024_s26 = smov 0  }
   0x9 LB: > { %s3917_s27 = sadd.s32 4294967295, %s2966_s26   ;;  %p56_p0 = scmp.ne.s32.totalorder %s2950_s22, %s2946_s21  ;;  %s2966_s26 = sphi %s3024_s26, %s22_s26   ;;  %s2962_s25 = sphi %s3022_s25, %s4328_s25   ;;  %s2958_s24 = sphi %s3020_s24, %s4327_s24   ;;  %s2954_s23 = sphi %s3018_s23, %s4326_s23   ;;  %s2950_s22 = sphi %s3016_s22, %s4325_s22   ;;  %s2946_s21 = sphi %s3014_s21, %s4324_s21  }
   0xa   : > { %p3046_p1 = scmp.eq.s32.totalorder %s3917_s27, 0  ;;  %p2008_p2 = scmp.ge.s32.totalorder %s2966_s26, 1 }
   0xb   : > { %p198_p3 = scmp.lt.s32.totalorder %s2966_s26, 3  ;;  %s4064_s1 = sld [smem:[#allocation116_spill]] }
   0xc   : > { %p3054_p4 = por %p3046_p1, %p56_p0  ;;  %s2968_s10 = smov [#allocation7]  }
   0xd   : > { %p3061_p5 = pnand %p2008_p2, %p198_p3  ;;  %s211_s11 = sshll.u32 %s2968_s10, 4  ;;  %s212_s11 = int_to_ptr.vmem [resolvable:$true] %s211_s11 }
   0xe   : > { %s237_s15 = sshll.u32 %s3913_s3, 4  ;;  %s2969_s16 = smov 256   ;;  %s238_s15 = int_to_ptr.hbm [resolvable:$true] %s237_s15 }
   0xf   : > { %p2559_p6 = pneg %p3061_p5  ;;  %s2970_s17 = smov 16  }
  0x10   : > { %s2971_s18 = smov [#allocation10]   ;;  %s223_s30 = sshll.u32 %s3912_s2, 4  ;;  %s224_s30 = int_to_ptr.hbm [resolvable:$true] %s223_s30 }
  0x11   : > { %s209_s8 = sshll.u32 %s4064_s1, 4  ;;  %p3069_p7 = pnand %p2559_p6, %p3046_p1  ;;  %s210_s8 = int_to_ptr.hbm [resolvable:$true] %s209_s8 }
  0x12   : > { %s239_s19 = sshll.u32 %s2971_s18, 4  ;;  %s2973_s14 = smov [#allocation12]   ;;  %s240_s19 = int_to_ptr.vmem [resolvable:$true] %s239_s19 }
  0x13   : > { %2562 = dma.hbm_to_vmem [thread:$0]  (!%p3069_p7), %s210_s8, 512, %s212_s11, [#allocation8], %s2969_s16, %s2969_s16, %s2970_s17  }
  0x14   : > { %2568 = dma.hbm_to_vmem [thread:$0]  (!%p3069_p7), %s238_s15, 4096, %s240_s19, [#allocation11], %s2969_s16, %s2969_s16, %s2970_s17  }
  0x15   : > { %s251_s8 = sshll.u32 %s3914_s4, 4  ;;  %s2972_s11 = smov [#allocation9]   ;;  %s252_s8 = int_to_ptr.hbm [resolvable:$true] %s251_s8 }
  0x16   : > { %s225_s13 = sshll.u32 %s2972_s11, 4  ;;  %s253_s18 = sshll.u32 %s2973_s14, 4  ;;  %s226_s13 = int_to_ptr.vmem [resolvable:$true] %s225_s13  ;;  %s254_s18 = int_to_ptr.vmem [resolvable:$true] %s253_s18 }
  0x17   : > { %2565 = dma.hbm_to_vmem [thread:$0]  (!%p3069_p7), %s224_s30, 4096, %s226_s13, [#allocation8], %s2969_s16, %s2969_s16, %s2970_s17  }
  0x18   : > { %2571 = dma.hbm_to_vmem [thread:$0]  (!%p3069_p7), %s252_s8, 4096, %s254_s18, [#allocation11], %s2969_s16, %s2969_s16, %s2970_s17  }
  0x19   : > { %s31_s15 = sadd.s32 1, %s2962_s25  ;;  %s43_s19 = sadd.s32 1, %s2954_s23 }
  0x1a   : > { %p32_p8 = scmp.ge.s32.totalorder %s31_s15, 2  ;;  %p50_p9 = scmp.ne.s32.totalorder %s2954_s23, %s2950_s22 }
  0x1b   : > { %p51_p10 = scmp.eq.s32.totalorder %s2966_s26, 0  ;;  %p2580_p11 = scmp.lt.s32.totalorder %s2966_s26, 2 }
  0x1c   : > { %s4330_s15 = smov (%p32_p8, %s31_s15), 0  ;;  %s270_s21 = sand.u32 1, %s2954_s23  }
  0x1d   : > { %p3098_p12 = por %p51_p10, %p50_p9  ;;  %s38_s30 = ssub.s32 %s2962_s25, %s4330_s15 }
  0x1e   : > { %p41_p13 = scmp.eq.s32.totalorder %s38_s30, 0  ;;  %s2014_s12 = sshll.u32 %s270_s21, 5 }
  0x1f   : > { %s2436_s16 = sshll.u32 %s2962_s25, 5  ;;  %s274_s11 = scalar_lea.vmem [#allocation4], %s2014_s12 }
  0x20   : > { %s3107_s17 = scalar_select %p41_p13, %s2954_s23, %s43_s19  }
  0x21   : > { %s280_s8 = scalar_lea.hbm %s3910_s0, %s2436_s16  ;;  %s283_s13 = sshll.u32 %s274_s11, 4  ;;  %s284_s13 = int_to_ptr.vmem [resolvable:$true] %s283_s13 }
  0x22   : > { %s281_s14 = sshll.u32 %s280_s8, 4  ;;  %p2573_p0 = pnand %p2580_p11, %p3098_p12  ;;  %s282_s14 = int_to_ptr.hbm [resolvable:$true] %s281_s14 }
  0x23   : > { %s271_s18 = scalar_lea.sflag [#allocation5], %s270_s21  ;;  %s2974_s27 = smov 128  }
  0x24   : > { %s2975_s1 = smov 8   ;;  %295 = sbr.rel (%p3061_p5) target bundleno = 1442 (0x5a2), region = 44 }
  0x25   : > { %2575 = dma.hbm_to_vmem [thread:$0]  (!%p2573_p0), %s282_s14, 512, %s284_s13, %s271_s18, %s2974_s27, %s2974_s27, %s2975_s1  }
  0x29   : > { %s297_s19 = sand.u32 1, %s2950_s22  }
  0x2a   : > { %s2018_s30 = sshll.u32 %s297_s19, 5  ;;  %s298_s16 = scalar_lea.sflag [#allocation5], %s297_s19 }
  0x2b   : > { %s3119_s12 = scalar_lea.vmem [#allocation4], %s2018_s30 }
  0x2c   : > { %2929 = dma.done.wait (%p3054_p4), %s298_s16, 512  }
  0x2d   : > { %2931 = vsyncadd (%p3054_p4), %s298_s16, 4294966784 }
  0x2e   : > { %2933 = dma.done.wait (%p3046_p1), [#allocation8], 4608  }
  0x2f   : > { %2935 = vsyncadd (%p3046_p1), [#allocation8], 4294962688 }
  0x30   : > { %2937 = dma.done.wait (%p3046_p1), [#allocation11], 8192  }
  0x31   : > { %2939 = vsyncadd (%p3046_p1), [#allocation11], 4294959104  ;;  %p2023_p2 = scmp.ne.s32.totalorder %s2958_s24, 0 }
  0x33   : > { %351 = sbr.rel (%p2023_p2) target bundleno = 61 (0x3d), region = 68 }
  0x38   : > { %v2976_v0 = vmov 0.0  }
  0x39   : > { %352 = vst [vmem:[#allocation3 + $0x10] sm:$0xff] %v2976_v0 }
  0x3a   : > { %353 = vst [vmem:[#allocation3] sm:$0xff] %v2976_v0 }
  0x3b   : > { %354 = vst [vmem:[#allocation3 + $0x18] sm:$0xff] %v2976_v0 }
  0x3c   : > { %355 = vst [vmem:[#allocation3 + $0x8] sm:$0xff] %v2976_v0 }
  0x3d PF: > { %v2026_v1 = vld [vmem:[#allocation7] sm:$0xf]  ;;  %v2439_v2 = vld [vmem:[#allocation7 + $0xc] sm:$0xf0]  ;;  %vm389_vm0 = vcmask 1046528   ;;  %vm390_vm1 = vcmask 1047552  }
  0x3e   : > { %v2027_v3 = vor.u32 %v2439_v2, %v2026_v1  ;;  %v2437_v4 = vld [vmem:[#allocation7 + $0x4] sm:$0xf]  ;;  %v2028_v5 = vld [vmem:[#allocation7 + $0x10] sm:$0xf0]  ;;  %v2977_v6 = vmov 65535   ;;  %v357_v12 = vld [vmem:[%s3119_s12 + $0x8] sm:$0xff] }
  0x3f   : > { %v391_v7 = vsel %vm389_vm0, 4294967295, %v2977_v6  ;;  %v2031_v8 = vor.u32 %v2437_v4, %v2028_v5  ;;  %v2034_v9 = vld [vmem:[#allocation7 + $0x8] sm:$0xf]  ;;  %v2440_v10 = vld [vmem:[#allocation7 + $0x14] sm:$0xf0]  ;;  %v356_v11 = vld [vmem:[%s3119_s12] sm:$0xff] }
  0x40   : > { %v392_v13 = vsel %vm390_vm1, %v391_v7, 0  ;;  %v2035_v14 = vor.u32 %v2440_v10, %v2034_v9  ;;  %v2438_v15 = vld [vmem:[#allocation7 + $0xc] sm:$0xf]  ;;  %v2036_v16 = vld [vmem:[#allocation7 + $0x18] sm:$0xf0]  ;;  %vm382_vm2 = vcmask 121856   ;;  %v360_v35 = vpack.c.bf16 %v357_v12, %v356_v11 }
  0x41   : > { %v394_v17 = vand.u32 %v2027_v3, %v392_v13  ;;  %v397_v18 = vand.u32 %v2031_v8, %v392_v13  ;;  %v2039_v19 = vor.u32 %v2438_v15, %v2036_v16  ;;  %v2162_v20 = vld [vmem:[#allocation12 + $0xe0] sm:$0xf]  ;;  %v2471_v21 = vld [vmem:[#allocation12 + $0xec] sm:$0xf0]  ;;  %v2469_v22 = vld [vmem:[#allocation12 + $0xe4] sm:$0xf] }
  0x42   : > { %v400_v23 = vand.u32 %v2035_v14, %v392_v13  ;;  %v3136_v24 = vor.u32 %v2471_v21, %v2162_v20  ;;  %v2164_v25 = vld [vmem:[#allocation12 + $0xf0] sm:$0xf0]  ;;  %v2170_v26 = vld [vmem:[#allocation12 + $0xe8] sm:$0xf]  ;;  %v2472_v27 = vld [vmem:[#allocation12 + $0xf4] sm:$0xf0] }
  0x43   : > { %412 = vmatpush.bf16.msra.mxu0 %v394_v17  ;;  %431 = vmatpush.bf16.msra.mxu1 %v397_v18  ;;  %v403_v28 = vand.u32 %v2039_v19, %v392_v13  ;;  %v3138_v29 = vor.u32 %v2469_v22, %v2164_v25  ;;  %v3140_v30 = vor.u32 %v2472_v27, %v2170_v26  ;;  %v2470_v31 = vld [vmem:[#allocation12 + $0xec] sm:$0xf]  ;;  %v2172_v32 = vld [vmem:[#allocation12 + $0xf8] sm:$0xf0]  ;;  %v2146_v33 = vld [vmem:[#allocation12 + $0xc0] sm:$0xf] }
  0x44   : > { %450 = vmatpush.bf16.msra.mxu2 %v400_v23  ;;  %v3143_v34 = vor.u32 %v2470_v31, %v2172_v32  ;;  %v2467_v36 = vld [vmem:[#allocation12 + $0xcc] sm:$0xf0]  ;;  %v2465_v37 = vld [vmem:[#allocation12 + $0xc4] sm:$0xf]  ;;  %v2148_v38 = vld [vmem:[#allocation12 + $0xd0] sm:$0xf0] }
  0x45   : > { %469 = vmatpush.bf16.msra.mxu3 %v403_v28  ;;  %v3146_v39 = vor.u32 %v2467_v36, %v2146_v33  ;;  %v3148_v40 = vor.u32 %v2465_v37, %v2148_v38  ;;  %v2154_v41 = vld [vmem:[#allocation12 + $0xc8] sm:$0xf]  ;;  %v2468_v42 = vld [vmem:[#allocation12 + $0xd4] sm:$0xf0]  ;;  %v2466_v43 = vld [vmem:[#allocation12 + $0xcc] sm:$0xf] }
  0x46   : > { %v3152_v44 = vor.u32 %v2468_v42, %v2154_v41  ;;  %v2156_v45 = vld [vmem:[#allocation12 + $0xd8] sm:$0xf0]  ;;  %v2130_v46 = vld [vmem:[#allocation12 + $0xa0] sm:$0xf]  ;;  %v2463_v47 = vld [vmem:[#allocation12 + $0xac] sm:$0xf0]  ;;  %2040 = vmatmul.msk.bf16.vlgmr.msra.gmra.mxu0 %vm382_vm2, %v360_v35  ;;  %2042 = vmatmul.msk.bf16.vlgmr.msra.gmra.mxu1 %vm382_vm2, %v360_v35 }
  0x47   : > { %707 = vmatpush.bf16.msrb.mxu0 %v3136_v24  ;;  %720 = vmatpush.bf16.msrb.mxu1 %v3138_v29  ;;  %v3154_v48 = vor.u32 %v2466_v43, %v2156_v45  ;;  %v2461_v49 = vld [vmem:[#allocation12 + $0xa4] sm:$0xf]  ;;  %v2132_v50 = vld [vmem:[#allocation12 + $0xb0] sm:$0xf0]  ;;  %v2138_v51 = vld [vmem:[#allocation12 + $0xa8] sm:$0xf]  ;;  %v3160_v52 = vor.u32 %v2463_v47, %v2130_v46 }
  0x48   : > { %733 = vmatpush.bf16.msrb.mxu2 %v3140_v30  ;;  %2046 = vmatmul.msk.bf16.vlgmr.msra.gmra.mxu3 %vm382_vm2, %v360_v35  ;;  %v2464_v53 = vld [vmem:[#allocation12 + $0xb4] sm:$0xf0]  ;;  %v2462_v54 = vld [vmem:[#allocation12 + $0xac] sm:$0xf]  ;;  %v2140_v55 = vld [vmem:[#allocation12 + $0xb8] sm:$0xf0]  ;;  %v3163_v56 = vor.u32 %v2461_v49, %v2132_v50 }
  0x49   : > { %746 = vmatpush.bf16.msrb.mxu3 %v3143_v34  ;;  %2044 = vmatmul.msk.bf16.vlgmr.msra.gmra.mxu2 %vm382_vm2, %v360_v35  ;;  %v2114_v57 = vld [vmem:[#allocation12 + $0x80] sm:$0xf]  ;;  %v2459_v58 = vld [vmem:[#allocation12 + $0x8c] sm:$0xf0]  ;;  %v3168_v59 = vor.u32 %v2464_v53, %v2138_v51  ;;  %v3170_v60 = vor.u32 %v2462_v54, %v2140_v55  ;;  %v2457_v61 = vld [vmem:[#allocation12 + $0x84] sm:$0xf] }
  0x4a   : > { %4068 = vst [vmem:[#allocation18_spill] sm:$0xff] %v3163_v56  ;;  %v2116_v62 = vld [vmem:[#allocation12 + $0x90] sm:$0xf0]  ;;  %v2122_v63 = vld [vmem:[#allocation12 + $0x88] sm:$0xf]  ;;  %v3173_v3 = vor.u32 %v2459_v58, %v2114_v57  ;;  %v359_v18 = vld [vmem:[%s3119_s12 + $0x18] sm:$0xff] }
  0x4b   : > { %708 = vmatpush.bf16.msrb.mxu0 %v3146_v39  ;;  %721 = vmatpush.bf16.msrb.mxu1 %v3148_v40  ;;  %4069 = vst [vmem:[#allocation19_spill] sm:$0xff] %v3168_v59  ;;  %v2460_v0 = vld [vmem:[#allocation12 + $0x94] sm:$0xf0]  ;;  %v2458_v1 = vld [vmem:[#allocation12 + $0x8c] sm:$0xf]  ;;  %v3176_v4 = vor.u32 %v2457_v61, %v2116_v62  ;;  %v358_v16 = vld [vmem:[%s3119_s12 + $0x10] sm:$0xff] }
  0x4c   : > { %734 = vmatpush.bf16.msrb.mxu2 %v3152_v44  ;;  %4070 = vst [vmem:[#allocation20_spill] sm:$0xff] %v3170_v60  ;;  %v2124_v2 = vld [vmem:[#allocation12 + $0x98] sm:$0xf0]  ;;  %v2098_v5 = vld [vmem:[#allocation12 + $0x60] sm:$0xf]  ;;  %v3180_v8 = vor.u32 %v2460_v0, %v2122_v63  ;;  %v361_v32 = vpack.c.bf16 %v359_v18, %v358_v16  ;;  %s2978_s27 = smov [#allocation13]  }
  0x4d   : > { %747 = vmatpush.bf16.msrb.mxu3 %v3154_v48  ;;  %4071 = vst [vmem:[#allocation21_spill] sm:$0xff] %v3173_v3  ;;  %v2455_v6 = vld [vmem:[#allocation12 + $0x6c] sm:$0xf0]  ;;  %v2453_v7 = vld [vmem:[#allocation12 + $0x64] sm:$0xf]  ;;  %v3182_v9 = vor.u32 %v2458_v1, %v2124_v2  ;;  %s1900_s28 = sshll.u32 %s2978_s27, 4  ;;  %s1901_s28 = int_to_ptr.vmem [resolvable:$true] %s1900_s28 }
  0x4e   : > { %4072 = vst [vmem:[#allocation22_spill] sm:$0xff] %v3176_v4  ;;  %v2100_v10 = vld [vmem:[#allocation12 + $0x70] sm:$0xf0]  ;;  %v2106_v11 = vld [vmem:[#allocation12 + $0x68] sm:$0xf]  ;;  %v3185_v15 = vor.u32 %v2455_v6, %v2098_v5  ;;  %s1902_s20 = sshll.u32 %s3916_s6, 4  ;;  %s1903_s20 = int_to_ptr.hbm [resolvable:$true] %s1902_s20 }
  0x4f   : > { %709 = vmatpush.bf16.msrb.mxu0 %v3160_v52  ;;  %722 = vmatpush.bf16.msrb.mxu1 %v3163_v56  ;;  %4073 = vst [vmem:[#allocation23_spill] sm:$0xff] %v3180_v8  ;;  %v2456_v12 = vld [vmem:[#allocation12 + $0x74] sm:$0xf0]  ;;  %v2454_v13 = vld [vmem:[#allocation12 + $0x6c] sm:$0xf]  ;;  %v3189_v17 = vor.u32 %v2453_v7, %v2100_v10  ;;  %s4323_s21 = sadd.s32 4294967295, %s2966_s26  }
  0x50   : > { %735 = vmatpush.bf16.msrb.mxu2 %v3168_v59  ;;  %4074 = vst [vmem:[#allocation24_spill] sm:$0xff] %v3182_v9  ;;  %v2108_v14 = vld [vmem:[#allocation12 + $0x78] sm:$0xf0]  ;;  %v2082_v19 = vld [vmem:[#allocation12 + $0x40] sm:$0xf]  ;;  %v3194_v21 = vor.u32 %v2456_v12, %v2106_v11  ;;  %p2585_p1 = scmp.eq.s32.totalorder %s4323_s21, 1 }
  0x51   : > { %748 = vmatpush.bf16.msrb.mxu3 %v3170_v60  ;;  %4075 = vst [vmem:[#allocation25_spill] sm:$0xff] %v3185_v15  ;;  %v2451_v20 = vld [vmem:[#allocation12 + $0x4c] sm:$0xf0]  ;;  %v3196_v22 = vor.u32 %v2454_v13, %v2108_v14  ;;  %v2449_v23 = vld [vmem:[#allocation12 + $0x44] sm:$0xf] }
  0x52   : > { %4076 = vst [vmem:[#allocation26_spill] sm:$0xff] %v3189_v17  ;;  %v2084_v25 = vld [vmem:[#allocation12 + $0x50] sm:$0xf0]  ;;  %v2090_v26 = vld [vmem:[#allocation12 + $0x48] sm:$0xf]  ;;  %v3199_v33 = vor.u32 %v2451_v20, %v2082_v19 }
  0x53   : > { %710 = vmatpush.bf16.msrb.mxu0 %v3173_v3  ;;  %723 = vmatpush.bf16.msrb.mxu1 %v3176_v4  ;;  %4077 = vst [vmem:[#allocation27_spill] sm:$0xff] %v3194_v21  ;;  %v2452_v27 = vld [vmem:[#allocation12 + $0x54] sm:$0xf0]  ;;  %v2450_v28 = vld [vmem:[#allocation12 + $0x4c] sm:$0xf]  ;;  %v3202_v35 = vor.u32 %v2449_v23, %v2084_v25 }
  0x54   : > { %736 = vmatpush.bf16.msrb.mxu2 %v3180_v8  ;;  %4078 = vst [vmem:[#allocation28_spill] sm:$0xff] %v3196_v22  ;;  %v2092_v31 = vld [vmem:[#allocation12 + $0x58] sm:$0xf0]  ;;  %v2066_v36 = vld [vmem:[#allocation12 + $0x20] sm:$0xf]  ;;  %v3206_v38 = vor.u32 %v2452_v27, %v2090_v26 }
  0x55   : > { %749 = vmatpush.bf16.msrb.mxu3 %v3182_v9  ;;  %4079 = vst [vmem:[#allocation29_spill] sm:$0xff] %v3199_v33  ;;  %v2447_v37 = vld [vmem:[#allocation12 + $0x2c] sm:$0xf0]  ;;  %v3208_v41 = vor.u32 %v2450_v28, %v2092_v31  ;;  %v2445_v42 = vld [vmem:[#allocation12 + $0x24] sm:$0xf] }
  0x56   : > { %4080 = vst [vmem:[#allocation30_spill] sm:$0xff] %v3202_v35  ;;  %v2068_v43 = vld [vmem:[#allocation12 + $0x30] sm:$0xf0]  ;;  %v2074_v45 = vld [vmem:[#allocation12 + $0x28] sm:$0xf]  ;;  %2041 = vmatmul.msk.bf16.gmra.mxu0 %vm382_vm2, %v361_v32  ;;  %2043 = vmatmul.msk.bf16.gmra.mxu1 %vm382_vm2, %v361_v32  ;;  %v3214_v50 = vor.u32 %v2447_v37, %v2066_v36 }
  0x57   : > { %711 = vmatpush.bf16.msrb.mxu0 %v3185_v15  ;;  %724 = vmatpush.bf16.msrb.mxu1 %v3189_v17  ;;  %4081 = vst [vmem:[#allocation31_spill] sm:$0xff] %v3206_v38  ;;  %v2448_v46 = vld [vmem:[#allocation12 + $0x34] sm:$0xf0]  ;;  %v2446_v47 = vld [vmem:[#allocation12 + $0x2c] sm:$0xf]  ;;  %v3217_v54 = vor.u32 %v2445_v42, %v2068_v43 }
  0x58   : > { %737 = vmatpush.bf16.msrb.mxu2 %v3194_v21  ;;  %4082 = vst [vmem:[#allocation32_spill] sm:$0xff] %v3208_v41  ;;  %v2076_v49 = vld [vmem:[#allocation12 + $0x38] sm:$0xf0]  ;;  %2047 = vmatmul.msk.bf16.gmra.mxu3 %vm382_vm2, %v361_v32  ;;  %v2050_v51 = vld [vmem:[#allocation12] sm:$0xf]  ;;  %v3222_v61 = vor.u32 %v2448_v46, %v2074_v45 }
  0x59   : > { %750 = vmatpush.bf16.msrb.mxu3 %v3196_v22  ;;  %4083 = vst [vmem:[#allocation33_spill] sm:$0xff] %v3214_v50  ;;  %v2443_v53 = vld [vmem:[#allocation12 + $0xc] sm:$0xf0]  ;;  %2045 = vmatmul.msk.bf16.gmra.mxu2 %vm382_vm2, %v361_v32  ;;  %v2441_v55 = vld [vmem:[#allocation12 + $0x4] sm:$0xf]  ;;  %v3224_v62 = vor.u32 %v2446_v47, %v2076_v49  ;;  %v511_v46 = vld [vmem:[#allocation3 + $0x18] sm:$0xff] }
  0x5a   : > { %4084 = vst [vmem:[#allocation34_spill] sm:$0xff] %v3217_v54  ;;  %v2052_v57 = vld [vmem:[#allocation12 + $0x10] sm:$0xf0]  ;;  %v2058_v58 = vld [vmem:[#allocation12 + $0x8] sm:$0xf]  ;;  %v3227_v7 = vor.u32 %v2443_v53, %v2050_v51 }
  0x5b   : > { %712 = vmatpush.bf16.msrb.mxu0 %v3199_v33  ;;  %725 = vmatpush.bf16.msrb.mxu1 %v3202_v35  ;;  %4085 = vst [vmem:[#allocation35_spill] sm:$0xff] %v3222_v61  ;;  %v2444_v63 = vld [vmem:[#allocation12 + $0x14] sm:$0xf0]  ;;  %v2290_v0 = vld [vmem:[#allocation9 + $0xe0] sm:$0xf]  ;;  %v3230_v13 = vor.u32 %v2441_v55, %v2052_v57 }
  0x5c   : > { %738 = vmatpush.bf16.msrb.mxu2 %v3206_v38  ;;  %4086 = vst [vmem:[#allocation36_spill] sm:$0xff] %v3224_v62  ;;  %v2503_v1 = vld [vmem:[#allocation9 + $0xec] sm:$0xf0]  ;;  %v2442_v2 = vld [vmem:[#allocation12 + $0xc] sm:$0xf]  ;;  %v3236_v19 = vor.u32 %v2444_v63, %v2058_v58 }
  0x5d   : > { %751 = vmatpush.bf16.msrb.mxu3 %v3208_v41  ;;  %v2060_v5 = vld [vmem:[#allocation12 + $0x18] sm:$0xf0]  ;;  %v2501_v6 = vld [vmem:[#allocation9 + $0xe4] sm:$0xf]  ;;  %4087 = vst [vmem:[#allocation37_spill] sm:$0xff] %v3227_v7  ;;  %v3232_v14 = vor.u32 %v2503_v1, %v2290_v0  ;;  %v514_v1 = vpack.c.bf16 %v511_v46, %v511_v46 }
  0x5e   : > { %v2292_v10 = vld [vmem:[#allocation9 + $0xf0] sm:$0xf0]  ;;  %v2298_v11 = vld [vmem:[#allocation9 + $0xe8] sm:$0xf]  ;;  %v2504_v12 = vld [vmem:[#allocation9 + $0xf4] sm:$0xf0]  ;;  %v3238_v20 = vor.u32 %v2442_v2, %v2060_v5 }
  0x5f   : > { %713 = vmatpush.bf16.msrb.mxu0 %v3214_v50  ;;  %726 = vmatpush.bf16.msrb.mxu1 %v3217_v54  ;;  %4088 = vst [vmem:[#allocation38_spill] sm:$0xff] %v3230_v13  ;;  %v2502_v16 = vld [vmem:[#allocation9 + $0xec] sm:$0xf]  ;;  %v2300_v18 = vld [vmem:[#allocation9 + $0xf8] sm:$0xf0]  ;;  %v3240_v26 = vor.u32 %v2501_v6, %v2292_v10  ;;  %v3242_v27 = vor.u32 %v2504_v12, %v2298_v11 }
  0x60   : > { %4089 = vst [vmem:[#allocation39_spill] sm:$0xff] %v3232_v14  ;;  %739 = vmatpush.bf16.msrb.mxu2 %v3222_v61  ;;  %v2274_v23 = vld [vmem:[#allocation9 + $0xc0] sm:$0xf]  ;;  %v2499_v25 = vld [vmem:[#allocation9 + $0xcc] sm:$0xf0]  ;;  %v3245_v31 = vor.u32 %v2502_v16, %v2300_v18 }
  0x61   : > { %752 = vmatpush.bf16.msrb.mxu3 %v3224_v62  ;;  %4090 = vst [vmem:[#allocation40_spill] sm:$0xff] %v3236_v19  ;;  %v2497_v28 = vld [vmem:[#allocation9 + $0xc4] sm:$0xf]  ;;  %v2276_v32 = vld [vmem:[#allocation9 + $0xd0] sm:$0xf0]  ;;  %v3249_v42 = vor.u32 %v2499_v25, %v2274_v23 }
  0x62   : > { %4091 = vst [vmem:[#allocation41_spill] sm:$0xff] %v3238_v20  ;;  %v2282_v36 = vld [vmem:[#allocation9 + $0xc8] sm:$0xf]  ;;  %v2500_v37 = vld [vmem:[#allocation9 + $0xd4] sm:$0xf0]  ;;  %v3255_v51 = vor.u32 %v2497_v28, %v2276_v32 }
  0x63   : > { %4092 = vst [vmem:[#allocation42_spill] sm:$0xff] %v3240_v26  ;;  %714 = vmatpush.bf16.msrb.mxu0 %v3227_v7  ;;  %727 = vmatpush.bf16.msrb.mxu1 %v3230_v13  ;;  %v2498_v43 = vld [vmem:[#allocation9 + $0xcc] sm:$0xf]  ;;  %v2284_v45 = vld [vmem:[#allocation9 + $0xd8] sm:$0xf0]  ;;  %v3257_v53 = vor.u32 %v2500_v37, %v2282_v36 }
  0x64   : > { %4093 = vst [vmem:[#allocation43_spill] sm:$0xff] %v3242_v27  ;;  %740 = vmatpush.bf16.msrb.mxu2 %v3236_v19  ;;  %v2258_v47 = vld [vmem:[#allocation9 + $0xa0] sm:$0xf]  ;;  %v2495_v49 = vld [vmem:[#allocation9 + $0xac] sm:$0xf0]  ;;  %v3260_v57 = vor.u32 %v2498_v43, %v2284_v45 }
  0x65   : > { %4094 = vst [vmem:[#allocation44_spill] sm:$0xff] %v3245_v31  ;;  %753 = vmatpush.bf16.msrb.mxu3 %v3238_v20  ;;  %v2493_v55 = vld [vmem:[#allocation9 + $0xa4] sm:$0xf]  ;;  %v2260_v58 = vld [vmem:[#allocation9 + $0xb0] sm:$0xf0]  ;;  %v3263_v2 = vor.u32 %v2495_v49, %v2258_v47 }
  0x66   : > { %4095 = vst [vmem:[#allocation45_spill] sm:$0xff] %v3249_v42  ;;  %v2266_v63 = vld [vmem:[#allocation9 + $0xa8] sm:$0xf]  ;;  %v2496_v0 = vld [vmem:[#allocation9 + $0xb4] sm:$0xf0]  ;;  %v3267_v12 = vor.u32 %v2493_v55, %v2260_v58  ;;  %715 = vmatmul.bf16.vlgmr.msrb.gmra.mxu0 %v514_v1  ;;  %728 = vmatmul.bf16.vlgmr.msrb.gmra.mxu1 %v514_v1 }
  0x67   : > { %959 = vmatpush.bf16.msra.mxu0 %v3232_v14  ;;  %972 = vmatpush.bf16.msra.mxu1 %v3240_v26  ;;  %4096 = vst [vmem:[#allocation46_spill] sm:$0xff] %v3255_v51  ;;  %v2494_v5 = vld [vmem:[#allocation9 + $0xac] sm:$0xf]  ;;  %v2268_v6 = vld [vmem:[#allocation9 + $0xb8] sm:$0xf0]  ;;  %v3269_v16 = vor.u32 %v2496_v0, %v2266_v63 }
  0x68   : > { %985 = vmatpush.bf16.msra.mxu2 %v3242_v27  ;;  %4097 = vst [vmem:[#allocation47_spill] sm:$0xff] %v3257_v53  ;;  %v2242_v10 = vld [vmem:[#allocation9 + $0x80] sm:$0xf]  ;;  %v2491_v11 = vld [vmem:[#allocation9 + $0x8c] sm:$0xf0]  ;;  %v3272_v23 = vor.u32 %v2494_v5, %v2268_v6  ;;  %754 = vmatmul.bf16.vlgmr.msrb.gmra.mxu3 %v514_v1 }
  0x69   : > { %998 = vmatpush.bf16.msra.mxu3 %v3245_v31  ;;  %4098 = vst [vmem:[#allocation48_spill] sm:$0xff] %v3260_v57  ;;  %v2489_v18 = vld [vmem:[#allocation9 + $0x84] sm:$0xf]  ;;  %v2244_v25 = vld [vmem:[#allocation9 + $0x90] sm:$0xf0]  ;;  %v3275_v36 = vor.u32 %v2491_v11, %v2242_v10  ;;  %741 = vmatmul.bf16.vlgmr.msrb.gmra.mxu2 %v514_v1 }
  0x6a   : > { %4099 = vst [vmem:[#allocation49_spill] sm:$0xff] %v3263_v2  ;;  %v2250_v28 = vld [vmem:[#allocation9 + $0x88] sm:$0xf]  ;;  %v2492_v32 = vld [vmem:[#allocation9 + $0x94] sm:$0xf0]  ;;  %v3279_v47 = vor.u32 %v2489_v18, %v2244_v25 }
  0x6b   : > { %960 = vmatpush.bf16.msra.mxu0 %v3249_v42  ;;  %973 = vmatpush.bf16.msra.mxu1 %v3255_v51  ;;  %4100 = vst [vmem:[#allocation50_spill] sm:$0xff] %v3267_v12  ;;  %v2490_v37 = vld [vmem:[#allocation9 + $0x8c] sm:$0xf]  ;;  %v2252_v43 = vld [vmem:[#allocation9 + $0x98] sm:$0xf0]  ;;  %v3281_v49 = vor.u32 %v2492_v32, %v2250_v28 }
  0x6c   : > { %986 = vmatpush.bf16.msra.mxu2 %v3257_v53  ;;  %4101 = vst [vmem:[#allocation51_spill] sm:$0xff] %v3269_v16  ;;  %v2226_v45 = vld [vmem:[#allocation9 + $0x60] sm:$0xf]  ;;  %v2487_v46 = vld [vmem:[#allocation9 + $0x6c] sm:$0xf0]  ;;  %v3284_v58 = vor.u32 %v2490_v37, %v2252_v43 }
  0x6d   : > { %999 = vmatpush.bf16.msra.mxu3 %v3260_v57  ;;  %4102 = vst [vmem:[#allocation52_spill] sm:$0xff] %v3272_v23  ;;  %v2485_v55 = vld [vmem:[#allocation9 + $0x64] sm:$0xf]  ;;  %v2228_v63 = vld [vmem:[#allocation9 + $0x70] sm:$0xf0]  ;;  %v3287_v1 = vor.u32 %v2487_v46, %v2226_v45 }
  0x6e   : > { %4103 = vst [vmem:[#allocation53_spill] sm:$0xff] %v3275_v36  ;;  %v2234_v0 = vld [vmem:[#allocation9 + $0x68] sm:$0xf]  ;;  %v2488_v5 = vld [vmem:[#allocation9 + $0x74] sm:$0xf0]  ;;  %v3291_v18 = vor.u32 %v2485_v55, %v2228_v63 }
  0x6f   : > { %961 = vmatpush.bf16.msra.mxu0 %v3263_v2  ;;  %974 = vmatpush.bf16.msra.mxu1 %v3267_v12  ;;  %4104 = vst [vmem:[#allocation54_spill] sm:$0xff] %v3279_v47  ;;  %v2486_v6 = vld [vmem:[#allocation9 + $0x6c] sm:$0xf]  ;;  %v2236_v10 = vld [vmem:[#allocation9 + $0x78] sm:$0xf0]  ;;  %v3293_v25 = vor.u32 %v2488_v5, %v2234_v0 }
  0x70   : > { %987 = vmatpush.bf16.msra.mxu2 %v3269_v16  ;;  %4105 = vst [vmem:[#allocation55_spill] sm:$0xff] %v3281_v49  ;;  %v2210_v11 = vld [vmem:[#allocation9 + $0x40] sm:$0xf]  ;;  %v2483_v16 = vld [vmem:[#allocation9 + $0x4c] sm:$0xf0]  ;;  %v3296_v32 = vor.u32 %v2486_v6, %v2236_v10 }
  0x71   : > { %1000 = vmatpush.bf16.msra.mxu3 %v3272_v23  ;;  %4106 = vst [vmem:[#allocation56_spill] sm:$0xff] %v3284_v58  ;;  %v2481_v28 = vld [vmem:[#allocation9 + $0x44] sm:$0xf]  ;;  %v2212_v37 = vld [vmem:[#allocation9 + $0x50] sm:$0xf0]  ;;  %v3299_v46 = vor.u32 %v2483_v16, %v2210_v11 }
  0x72   : > { %4107 = vst [vmem:[#allocation57_spill] sm:$0xff] %v3287_v1  ;;  %v2218_v43 = vld [vmem:[#allocation9 + $0x48] sm:$0xf]  ;;  %v2484_v45 = vld [vmem:[#allocation9 + $0x54] sm:$0xf0]  ;;  %v3303_v55 = vor.u32 %v2481_v28, %v2212_v37 }
  0x73   : > { %962 = vmatpush.bf16.msra.mxu0 %v3275_v36  ;;  %975 = vmatpush.bf16.msra.mxu1 %v3279_v47  ;;  %4108 = vst [vmem:[#allocation58_spill] sm:$0xff] %v3291_v18  ;;  %v2482_v36 = vld [vmem:[#allocation9 + $0x4c] sm:$0xf]  ;;  %v2220_v47 = vld [vmem:[#allocation9 + $0x58] sm:$0xf0]  ;;  %v3305_v63 = vor.u32 %v2484_v45, %v2218_v43 }
  0x74   : > { %988 = vmatpush.bf16.msra.mxu2 %v3281_v49  ;;  %4109 = vst [vmem:[#allocation59_spill] sm:$0xff] %v3293_v25  ;;  %v2194_v23 = vld [vmem:[#allocation9 + $0x20] sm:$0xf]  ;;  %v2479_v49 = vld [vmem:[#allocation9 + $0x2c] sm:$0xf0]  ;;  %v3308_v5 = vor.u32 %v2482_v36, %v2220_v47 }
  0x75   : > { %1001 = vmatpush.bf16.msra.mxu3 %v3284_v58  ;;  %4110 = vst [vmem:[#allocation60_spill] sm:$0xff] %v3296_v32  ;;  %v2477_v0 = vld [vmem:[#allocation9 + $0x24] sm:$0xf]  ;;  %v2196_v6 = vld [vmem:[#allocation9 + $0x30] sm:$0xf0]  ;;  %v3311_v11 = vor.u32 %v2479_v49, %v2194_v23 }
  0x76   : > { %4111 = vst [vmem:[#allocation61_spill] sm:$0xff] %v3299_v46  ;;  %v2202_v16 = vld [vmem:[#allocation9 + $0x28] sm:$0xf]  ;;  %v2480_v10 = vld [vmem:[#allocation9 + $0x34] sm:$0xf0]  ;;  %v3315_v28 = vor.u32 %v2477_v0, %v2196_v6 }
  0x77   : > { %963 = vmatpush.bf16.msra.mxu0 %v3287_v1  ;;  %976 = vmatpush.bf16.msra.mxu1 %v3291_v18  ;;  %4112 = vst [vmem:[#allocation62_spill] sm:$0xff] %v3303_v55  ;;  %v2478_v1 = vld [vmem:[#allocation9 + $0x2c] sm:$0xf]  ;;  %v2204_v18 = vld [vmem:[#allocation9 + $0x38] sm:$0xf0]  ;;  %v3317_v37 = vor.u32 %v2480_v10, %v2202_v16 }
  0x78   : > { %989 = vmatpush.bf16.msra.mxu2 %v3293_v25  ;;  %4113 = vst [vmem:[#allocation63_spill] sm:$0xff] %v3305_v63  ;;  %v2178_v58 = vld [vmem:[#allocation9] sm:$0xf]  ;;  %v2475_v25 = vld [vmem:[#allocation9 + $0xc] sm:$0xf0]  ;;  %v3320_v47 = vor.u32 %v2478_v1, %v2204_v18 }
  0x79   : > { %1002 = vmatpush.bf16.msra.mxu3 %v3296_v32  ;;  %4114 = vst [vmem:[#allocation64_spill] sm:$0xff] %v3308_v5  ;;  %v2473_v36 = vld [vmem:[#allocation9 + $0x4] sm:$0xf]  ;;  %v2180_v43 = vld [vmem:[#allocation9 + $0x10] sm:$0xf0]  ;;  %v3323_v45 = vor.u32 %v2475_v25, %v2178_v58 }
  0x7a   : > { %4115 = vst [vmem:[#allocation65_spill] sm:$0xff] %v3311_v11  ;;  %v2186_v23 = vld [vmem:[#allocation9 + $0x8] sm:$0xf]  ;;  %v2476_v49 = vld [vmem:[#allocation9 + $0x14] sm:$0xf0]  ;;  %v507_v32 = vld [vmem:[#allocation3 + $0x10] sm:$0xff]  ;;  %v3327_v0 = vor.u32 %v2473_v36, %v2180_v43 }
  0x7b   : > { %964 = vmatpush.bf16.msra.mxu0 %v3299_v46  ;;  %977 = vmatpush.bf16.msra.mxu1 %v3303_v55  ;;  %4116 = vst [vmem:[#allocation66_spill] sm:$0xff] %v3315_v28  ;;  %v2474_v46 = vld [vmem:[#allocation9 + $0xc] sm:$0xf]  ;;  %v2188_v55 = vld [vmem:[#allocation9 + $0x18] sm:$0xf0]  ;;  %v3329_v6 = vor.u32 %v2476_v49, %v2186_v23  ;;  %v766_v18 = vpack.c.bf16 %v507_v32, %v507_v32 }
  0x7c   : > { %990 = vmatpush.bf16.msra.mxu2 %v3305_v63  ;;  %4117 = vst [vmem:[#allocation67_spill] sm:$0xff] %v3317_v37  ;;  %v3332_v1 = vor.u32 %v2474_v46, %v2188_v55 }
  0x7d   : > { %1003 = vmatpush.bf16.msra.mxu3 %v3308_v5  ;;  %4118 = vst [vmem:[#allocation68_spill] sm:$0xff] %v3320_v47 }
  0x7e   : > { %4119 = vst [vmem:[#allocation69_spill] sm:$0xff] %v3323_v45 }
  0x7f   : > { %965 = vmatpush.bf16.msra.mxu0 %v3311_v11  ;;  %978 = vmatpush.bf16.msra.mxu1 %v3315_v28  ;;  %4120 = vst [vmem:[#allocation70_spill] sm:$0xff] %v3327_v0 }
  0x80   : > { %991 = vmatpush.bf16.msra.mxu2 %v3317_v37  ;;  %4121 = vst [vmem:[#allocation71_spill] sm:$0xff] %v3329_v6 }
  0x81   : > { %1004 = vmatpush.bf16.msra.mxu3 %v3320_v47  ;;  %4122 = vst [vmem:[#allocation72_spill] sm:$0xff] %v3332_v1  ;;  %v2426_v47 = vld [vmem:[#allocation10 + $0xe8] sm:$0xf] }
  0x83   : > { %966 = vmatpush.bf16.msra.mxu0 %v3323_v45  ;;  %979 = vmatpush.bf16.msra.mxu1 %v3327_v0  ;;  %v2533_v0 = vld [vmem:[#allocation10 + $0xe4] sm:$0xf] }
  0x84   : > { %992 = vmatpush.bf16.msra.mxu2 %v3329_v6 }
  0x85   : > { %1005 = vmatpush.bf16.msra.mxu3 %v3332_v1 }
  0x86   : > { %967 = vmatmul.bf16.vlgmr.msra.gmra.mxu0 %v766_v18  ;;  %980 = vmatmul.bf16.vlgmr.msra.gmra.mxu1 %v766_v18 }
  0x87   : > { %993 = vmatmul.bf16.vlgmr.msra.gmra.mxu2 %v766_v18 }
  0x88   : > { %1006 = vmatmul.bf16.vlgmr.msra.gmra.mxu3 %v766_v18 }
  0xc3   : > { %v3338_v58 = vpop.f32.mrf.mxu0  ;;  %v3340_v25 = vpop.f32.mrf.mxu1 }
  0xcb   : > { %v3342_v16 = vpop.f32.mrf.mxu3  ;;  %v3344_v46 = vpop.f32.mrf.mxu0 }
  0xcc   : > { %4123 = vst [vmem:[#allocation73_spill] sm:$0xff] %v3344_v46  ;;  %v3346_v32 = vpop.f32.mrf.mxu1  ;;  %v3348_v55 = vpop.f32.mrf.mxu2  ;;  %v2418_v46 = vld [vmem:[#allocation10 + $0xe0] sm:$0xf] }
  0xcd   : > { %4124 = vst [vmem:[#allocation74_spill] sm:$0xff] %v3346_v32  ;;  %v2535_v32 = vld [vmem:[#allocation10 + $0xec] sm:$0xf0] }
  0xce   : > { %v3366_v45 = vor.u32 %v2535_v32, %v2418_v46  ;;  %v2531_v46 = vld [vmem:[#allocation10 + $0xcc] sm:$0xf0]  ;;  %v2529_v32 = vld [vmem:[#allocation10 + $0xc4] sm:$0xf] }
  0xd0   : > { %4133 = vst [vmem:[#allocation83_spill] sm:$0xff] %v3366_v45  ;;  %1223 = vmatpush.bf16.msrb.mxu0 %v3366_v45 }
  0xd3   : > { %v3350_v10 = vpop.f32.mrf.mxu3  ;;  %v3352_v36 = vpop.f32.mrf.mxu0 }
  0xd4   : > { %4125 = vst [vmem:[#allocation75_spill] sm:$0xff] %v3350_v10  ;;  %v3354_v43 = vpop.f32.mrf.mxu1  ;;  %v3356_v23 = vpop.f32.mrf.mxu2  ;;  %v2420_v10 = vld [vmem:[#allocation10 + $0xf0] sm:$0xf0] }
  0xd5   : > { %4126 = vst [vmem:[#allocation76_spill] sm:$0xff] %v3352_v36  ;;  %v2536_v36 = vld [vmem:[#allocation10 + $0xf4] sm:$0xf0]  ;;  %v3368_v37 = vor.u32 %v2533_v0, %v2420_v10  ;;  %v2404_v0 = vld [vmem:[#allocation10 + $0xd0] sm:$0xf0] }
  0xd6   : > { %4127 = vst [vmem:[#allocation77_spill] sm:$0xff] %v3354_v43  ;;  %v3370_v43 = vor.u32 %v2536_v36, %v2426_v47  ;;  %v2410_v47 = vld [vmem:[#allocation10 + $0xc8] sm:$0xf]  ;;  %v2532_v10 = vld [vmem:[#allocation10 + $0xd4] sm:$0xf0]  ;;  %v3382_v28 = vor.u32 %v2529_v32, %v2404_v0 }
  0xd7   : > { %4128 = vst [vmem:[#allocation78_spill] sm:$0xff] %v3356_v23  ;;  %v2534_v23 = vld [vmem:[#allocation10 + $0xec] sm:$0xf]  ;;  %1236 = vmatpush.bf16.msrb.mxu1 %v3368_v37  ;;  %v2525_v32 = vld [vmem:[#allocation10 + $0xa4] sm:$0xf] }
  0xd8   : > { %4134 = vst [vmem:[#allocation84_spill] sm:$0xff] %v3368_v37  ;;  %1249 = vmatpush.bf16.msrb.mxu2 %v3370_v43  ;;  %v2412_v37 = vld [vmem:[#allocation10 + $0xd8] sm:$0xf0] }
  0xd9   : > { %4135 = vst [vmem:[#allocation85_spill] sm:$0xff] %v3370_v43 }
  0xda   : > { %4139 = vst [vmem:[#allocation89_spill] sm:$0xff] %v3382_v28 }
  0xdb   : > { %v3358_v49 = vpop.f32.mrf.mxu3  ;;  %v3360_v18 = vpop.f32.mrf.mxu0  ;;  %1237 = vmatpush.bf16.msrb.mxu1 %v3382_v28  ;;  %v2396_v28 = vld [vmem:[#allocation10 + $0xb8] sm:$0xf0] }
  0xdc   : > { %4129 = vst [vmem:[#allocation79_spill] sm:$0xff] %v3358_v49  ;;  %v3362_v1 = vpop.f32.mrf.mxu1  ;;  %v3364_v6 = vpop.f32.mrf.mxu2  ;;  %v2428_v49 = vld [vmem:[#allocation10 + $0xf8] sm:$0xf0] }
  0xdd   : > { %4130 = vst [vmem:[#allocation80_spill] sm:$0xff] %v3360_v18  ;;  %v3373_v18 = vor.u32 %v2534_v23, %v2428_v49  ;;  %v3384_v23 = vor.u32 %v2532_v10, %v2410_v47  ;;  %v2530_v49 = vld [vmem:[#allocation10 + $0xcc] sm:$0xf]  ;;  %v2388_v47 = vld [vmem:[#allocation10 + $0xb0] sm:$0xf0] }
  0xde   : > { %4131 = vst [vmem:[#allocation81_spill] sm:$0xff] %v3362_v1  ;;  %v2402_v1 = vld [vmem:[#allocation10 + $0xc0] sm:$0xf]  ;;  %v3387_v43 = vor.u32 %v2530_v49, %v2412_v37  ;;  %v2394_v10 = vld [vmem:[#allocation10 + $0xa8] sm:$0xf]  ;;  %v3400_v49 = vor.u32 %v2525_v32, %v2388_v47 }
  0xdf   : > { %4132 = vst [vmem:[#allocation82_spill] sm:$0xff] %v3364_v6  ;;  %1262 = vmatpush.bf16.msrb.mxu3 %v3373_v18  ;;  %v3378_v6 = vor.u32 %v2531_v46, %v2402_v1  ;;  %1250 = vmatpush.bf16.msrb.mxu2 %v3384_v23  ;;  %v2386_v1 = vld [vmem:[#allocation10 + $0xa0] sm:$0xf]  ;;  %v2527_v46 = vld [vmem:[#allocation10 + $0xac] sm:$0xf0] }
  0xe0   : > { %4136 = vst [vmem:[#allocation86_spill] sm:$0xff] %v3373_v18  ;;  %v3396_v0 = vor.u32 %v2527_v46, %v2386_v1  ;;  %1238 = vmatpush.bf16.msrb.mxu1 %v3400_v49  ;;  %v2370_v1 = vld [vmem:[#allocation10 + $0x80] sm:$0xf]  ;;  %v2523_v46 = vld [vmem:[#allocation10 + $0x8c] sm:$0xf0] }
  0xe1   : > { %4137 = vst [vmem:[#allocation87_spill] sm:$0xff] %v3378_v6  ;;  %1224 = vmatpush.bf16.msrb.mxu0 %v3378_v6  ;;  %v2521_v32 = vld [vmem:[#allocation10 + $0x84] sm:$0xf]  ;;  %v2372_v47 = vld [vmem:[#allocation10 + $0x90] sm:$0xf0] }
  0xe2   : > { %4140 = vst [vmem:[#allocation90_spill] sm:$0xff] %v3384_v23 }
  0xe3   : > { %v3380_v36 = vpop.f32.mrf.mxu3  ;;  %4141 = vst [vmem:[#allocation91_spill] sm:$0xff] %v3387_v43  ;;  %v3389_v45 = vpop.f32.mrf.mxu0  ;;  %1263 = vmatpush.bf16.msrb.mxu3 %v3387_v43  ;;  %v3410_v43 = vor.u32 %v2523_v46, %v2370_v1  ;;  %v2354_v1 = vld [vmem:[#allocation10 + $0x60] sm:$0xf]  ;;  %v2519_v46 = vld [vmem:[#allocation10 + $0x6c] sm:$0xf0] }
  0xe4   : > { %4138 = vst [vmem:[#allocation88_spill] sm:$0xff] %v3380_v36  ;;  %v3391_v18 = vpop.f32.mrf.mxu2  ;;  %v2528_v36 = vld [vmem:[#allocation10 + $0xb4] sm:$0xf0]  ;;  %v3398_v37 = vpop.f32.mrf.mxu1 }
  0xe5   : > { %4142 = vst [vmem:[#allocation92_spill] sm:$0xff] %v3389_v45  ;;  %v3402_v6 = vor.u32 %v2528_v36, %v2394_v10  ;;  %1225 = vmatpush.bf16.msrb.mxu0 %v3396_v0  ;;  %v2378_v36 = vld [vmem:[#allocation10 + $0x88] sm:$0xf]  ;;  %v3412_v10 = vor.u32 %v2521_v32, %v2372_v47  ;;  %v2522_v45 = vld [vmem:[#allocation10 + $0x8c] sm:$0xf]  ;;  %v3426_v47 = vor.u32 %v2519_v46, %v2354_v1 }
  0xe6   : > { %4143 = vst [vmem:[#allocation93_spill] sm:$0xff] %v3391_v18  ;;  %v2526_v18 = vld [vmem:[#allocation10 + $0xac] sm:$0xf]  ;;  %v2517_v32 = vld [vmem:[#allocation10 + $0x64] sm:$0xf] }
  0xe7   : > { %4144 = vst [vmem:[#allocation94_spill] sm:$0xff] %v3396_v0  ;;  %v3405_v23 = vor.u32 %v2526_v18, %v2396_v28  ;;  %1251 = vmatpush.bf16.msrb.mxu2 %v3402_v6  ;;  %v2380_v0 = vld [vmem:[#allocation10 + $0x98] sm:$0xf0]  ;;  %1239 = vmatpush.bf16.msrb.mxu1 %v3412_v10  ;;  %v2513_v1 = vld [vmem:[#allocation10 + $0x44] sm:$0xf] }
  0xe8   : > { %4145 = vst [vmem:[#allocation95_spill] sm:$0xff] %v3398_v37  ;;  %v2524_v37 = vld [vmem:[#allocation10 + $0x94] sm:$0xf0] }
  0xe9   : > { %4146 = vst [vmem:[#allocation96_spill] sm:$0xff] %v3400_v49  ;;  %1264 = vmatpush.bf16.msrb.mxu3 %v3405_v23  ;;  %1226 = vmatpush.bf16.msrb.mxu0 %v3410_v43  ;;  %v3417_v18 = vor.u32 %v2524_v37, %v2378_v36  ;;  %v2520_v37 = vld [vmem:[#allocation10 + $0x74] sm:$0xf0] }
  0xea   : > { %4147 = vst [vmem:[#allocation97_spill] sm:$0xff] %v3402_v6  ;;  %v3419_v6 = vor.u32 %v2522_v45, %v2380_v0 }
  0xeb   : > { %4148 = vst [vmem:[#allocation98_spill] sm:$0xff] %v3405_v23  ;;  %v3414_v28 = vpop.f32.mrf.mxu3  ;;  %v718_v49 = vpop.f32.mrf.mxu0  ;;  %1252 = vmatpush.bf16.msrb.mxu2 %v3417_v18 }
  0xec   : > { %4149 = vst [vmem:[#allocation99_spill] sm:$0xff] %v3410_v43  ;;  %v3421_v23 = vpop.f32.mrf.mxu2  ;;  %v2362_v43 = vld [vmem:[#allocation10 + $0x68] sm:$0xf]  ;;  %v731_v36 = vpop.f32.mrf.mxu1  ;;  %v2518_v49 = vld [vmem:[#allocation10 + $0x6c] sm:$0xf] }
  0xed   : > { %4150 = vst [vmem:[#allocation100_spill] sm:$0xff] %v3412_v10  ;;  %1265 = vmatpush.bf16.msrb.mxu3 %v3419_v6  ;;  %v3430_v0 = vor.u32 %v2520_v37, %v2362_v43  ;;  %1227 = vmatpush.bf16.msrb.mxu0 %v3426_v47  ;;  %v2346_v43 = vld [vmem:[#allocation10 + $0x48] sm:$0xf] }
  0xee   : > { %4151 = vst [vmem:[#allocation101_spill] sm:$0xff] %v3414_v28  ;;  %v2356_v28 = vld [vmem:[#allocation10 + $0x70] sm:$0xf0] }
  0xef   : > { %4152 = vst [vmem:[#allocation102_spill] sm:$0xff] %v3417_v18  ;;  %v3428_v45 = vor.u32 %v2517_v32, %v2356_v28  ;;  %v2338_v18 = vld [vmem:[#allocation10 + $0x40] sm:$0xf]  ;;  %1253 = vmatpush.bf16.msrb.mxu2 %v3430_v0  ;;  %v2340_v28 = vld [vmem:[#allocation10 + $0x50] sm:$0xf0] }
  0xf0   : > { %4153 = vst [vmem:[#allocation103_spill] sm:$0xff] %v3419_v6  ;;  %v2515_v6 = vld [vmem:[#allocation10 + $0x4c] sm:$0xf0]  ;;  %v2516_v32 = vld [vmem:[#allocation10 + $0x54] sm:$0xf0]  ;;  %v3440_v37 = vor.u32 %v2513_v1, %v2340_v28 }
  0xf1   : > { %4154 = vst [vmem:[#allocation104_spill] sm:$0xff] %v3421_v23  ;;  %v2364_v23 = vld [vmem:[#allocation10 + $0x78] sm:$0xf0]  ;;  %1240 = vmatpush.bf16.msrb.mxu1 %v3428_v45  ;;  %v3438_v46 = vor.u32 %v2515_v6, %v2338_v18  ;;  %v3442_v36 = vor.u32 %v2516_v32, %v2346_v43  ;;  %v2511_v6 = vld [vmem:[#allocation10 + $0x2c] sm:$0xf0] }
  0xf2   : > { %4155 = vst [vmem:[#allocation105_spill] sm:$0xff] %v3426_v47  ;;  %v3433_v10 = vor.u32 %v2518_v49, %v2364_v23  ;;  %v2514_v23 = vld [vmem:[#allocation10 + $0x4c] sm:$0xf]  ;;  %v2348_v49 = vld [vmem:[#allocation10 + $0x58] sm:$0xf0] }
  0xf3   : > { %4156 = vst [vmem:[#allocation106_spill] sm:$0xff] %v3428_v45  ;;  %v757_v47 = vpop.f32.mrf.mxu3  ;;  %1228 = vmatpush.bf16.msrb.mxu0 %v3438_v46  ;;  %v3445_v45 = vor.u32 %v2514_v23, %v2348_v49  ;;  %v2509_v18 = vld [vmem:[#allocation10 + $0x24] sm:$0xf]  ;;  %1254 = vmatpush.bf16.msrb.mxu2 %v3442_v36  ;;  %v2324_v28 = vld [vmem:[#allocation10 + $0x30] sm:$0xf0] }
  0xf4   : > { %4157 = vst [vmem:[#allocation107_spill] sm:$0xff] %v3433_v10  ;;  %1266 = vmatpush.bf16.msrb.mxu3 %v3433_v10  ;;  %v744_v11 = vpop.f32.mrf.mxu2  ;;  %v2322_v10 = vld [vmem:[#allocation10 + $0x20] sm:$0xf]  ;;  %v2330_v43 = vld [vmem:[#allocation10 + $0x28] sm:$0xf]  ;;  %v3452_v47 = vor.u32 %v2509_v18, %v2324_v28 }
  0xf5   : > { %4158 = vst [vmem:[#allocation108_spill] sm:$0xff] %v3438_v46  ;;  %1241 = vmatpush.bf16.msrb.mxu1 %v3440_v37  ;;  %v3450_v1 = vor.u32 %v2511_v6, %v2322_v10  ;;  %v2512_v32 = vld [vmem:[#allocation10 + $0x34] sm:$0xf0]  ;;  %v2510_v23 = vld [vmem:[#allocation10 + $0x2c] sm:$0xf] }
  0xf6   : > { %4159 = vst [vmem:[#allocation109_spill] sm:$0xff] %v3440_v37  ;;  %v3454_v46 = vor.u32 %v2512_v32, %v2330_v43  ;;  %v2332_v11 = vld [vmem:[#allocation10 + $0x38] sm:$0xf0]  ;;  %v2507_v37 = vld [vmem:[#allocation10 + $0xc] sm:$0xf0] }
  0xf7   : > { %4160 = vst [vmem:[#allocation110_spill] sm:$0xff] %v3442_v36  ;;  %1229 = vmatpush.bf16.msrb.mxu0 %v3450_v1  ;;  %v3457_v49 = vor.u32 %v2510_v23, %v2332_v11  ;;  %v2306_v36 = vld [vmem:[#allocation10] sm:$0xf]  ;;  %v2308_v6 = vld [vmem:[#allocation10 + $0x10] sm:$0xf0] }
  0xf8   : > { %4161 = vst [vmem:[#allocation111_spill] sm:$0xff] %v3445_v45  ;;  %1267 = vmatpush.bf16.msrb.mxu3 %v3445_v45  ;;  %v2505_v45 = vld [vmem:[#allocation10 + $0x4] sm:$0xf]  ;;  %1255 = vmatpush.bf16.msrb.mxu2 %v3454_v46  ;;  %v3462_v10 = vor.u32 %v2507_v37, %v2306_v36  ;;  %v2314_v18 = vld [vmem:[#allocation10 + $0x8] sm:$0xf] }
  0xf9   : > { %4162 = vst [vmem:[#allocation112_spill] sm:$0xff] %v3450_v1  ;;  %1242 = vmatpush.bf16.msrb.mxu1 %v3452_v47  ;;  %v2508_v28 = vld [vmem:[#allocation10 + $0x14] sm:$0xf0]  ;;  %v3464_v43 = vor.u32 %v2505_v45, %v2308_v6  ;;  %v2506_v23 = vld [vmem:[#allocation10 + $0xc] sm:$0xf] }
  0xfa   : > { %4163 = vst [vmem:[#allocation113_spill] sm:$0xff] %v3452_v47  ;;  %v3466_v32 = vor.u32 %v2508_v28, %v2314_v18  ;;  %v2316_v11 = vld [vmem:[#allocation10 + $0x18] sm:$0xf0] }
  0xfb   : > { %1230 = vmatpush.bf16.msrb.mxu0 %v3462_v10  ;;  %v3469_v47 = vor.u32 %v2506_v23, %v2316_v11 }
  0xfc   : > { %1268 = vmatpush.bf16.msrb.mxu3 %v3457_v49  ;;  %1256 = vmatpush.bf16.msrb.mxu2 %v3466_v32 }
  0xfd   : > { %1243 = vmatpush.bf16.msrb.mxu1 %v3464_v43 }
  0xff   : > { %1291 = vmatpush.bf16.msra.mxu0 %v3136_v24 }
 0x100   : > { %1269 = vmatpush.bf16.msrb.mxu3 %v3469_v47  ;;  %1317 = vmatpush.bf16.msra.mxu2 %v3140_v30 }
 0x101   : > { %1304 = vmatpush.bf16.msra.mxu1 %v3138_v29 }
 0x103   : > { %v968_v1 = vpop.f32.mrf.mxu0  ;;  %v981_v45 = vpop.f32.mrf.mxu1  ;;  %1292 = vmatpush.bf16.msra.mxu0 %v3146_v39 }
 0x104   : > { %v1011_v37 = vadd.f32 %v968_v1, %v3338_v58  ;;  %v1012_v36 = vadd.f32 %v981_v45, %v3340_v25  ;;  %1330 = vmatpush.bf16.msra.mxu3 %v3143_v34  ;;  %1318 = vmatpush.bf16.msra.mxu2 %v3152_v44 }
 0x105   : > { %1305 = vmatpush.bf16.msra.mxu1 %v3148_v40 }
 0x106   : > { %2646 = vtanh.f32 %v1011_v37 }
 0x107   : > { %2648 = vtanh.f32 %v1012_v36  ;;  %1293 = vmatpush.bf16.msra.mxu0 %v3160_v52  ;;  %v509_v36 = vld [vmem:[#allocation3] sm:$0xff] }
 0x108   : > { %1331 = vmatpush.bf16.msra.mxu3 %v3154_v48  ;;  %1319 = vmatpush.bf16.msra.mxu2 %v3168_v59 }
 0x109   : > { %1306 = vmatpush.bf16.msra.mxu1 %v3163_v56 }
 0x10a   : > { %v994_v58 = vpop.f32.mrf.mxu2 }
 0x10b   : > { %v970_v1 = vpop.f32.mrf.mxu0  ;;  %v1007_v6 = vpop.f32.mrf.mxu3  ;;  %v1013_v11 = vadd.f32 %v994_v58, %v3348_v55  ;;  %1294 = vmatpush.bf16.msra.mxu0 %v3173_v3 }
 0x10c   : > { %v2647_v18 = vpop.eup %2646  ;;  %v1014_v25 = vadd.f32 %v1007_v6, %v3342_v16  ;;  %v983_v28 = vpop.f32.mrf.mxu1  ;;  %1332 = vmatpush.bf16.msra.mxu3 %v3170_v60  ;;  %1320 = vmatpush.bf16.msra.mxu2 %v3180_v8 }
 0x10d   : > { %v2649_v23 = vpop.eup %2648  ;;  %v1019_v45 = vmul.f32 0.5, %v2647_v18  ;;  %1307 = vmatpush.bf16.msra.mxu1 %v3176_v4 }
 0x10e   : > { %v1020_v37 = vmul.f32 0.5, %v2649_v23  ;;  %2650 = vtanh.f32 %v1014_v25 }
 0x10f   : > { %2652 = vtanh.f32 %v1013_v11  ;;  %1295 = vmatpush.bf16.msra.mxu0 %v3185_v15  ;;  %v1022_v55 = vadd.f32 0.5, %v1019_v45 }
 0x110   : > { %v1023_v16 = vadd.f32 0.5, %v1020_v37  ;;  %1333 = vmatpush.bf16.msra.mxu3 %v3182_v9  ;;  %1321 = vmatpush.bf16.msra.mxu2 %v3194_v21 }
 0x111   : > { %1308 = vmatpush.bf16.msra.mxu1 %v3189_v17 }
 0x112   : > { %v996_v1 = vpop.f32.mrf.mxu2  ;;  %v1025_v18 = vmul.f32 %v1023_v16, %v509_v36 }
 0x113   : > { %v1009_v58 = vpop.f32.mrf.mxu3  ;;  %1296 = vmatpush.bf16.msra.mxu0 %v3199_v33  ;;  %v4164_v1 = vld [vmem:[#allocation51_spill] sm:$0xff] }
 0x114   : > { %v2651_v6 = vpop.eup %2650  ;;  %1334 = vmatpush.bf16.msra.mxu3 %v3196_v22  ;;  %1322 = vmatpush.bf16.msra.mxu2 %v3206_v38  ;;  %v4166_v58 = vld [vmem:[#allocation53_spill] sm:$0xff] }
 0x115   : > { %v1026_v25 = vmul.f32 %v2651_v6, %v1022_v55  ;;  %v2653_v28 = vpop.eup %2652  ;;  %1309 = vmatpush.bf16.msra.mxu1 %v3202_v35  ;;  %v4165_v55 = vld [vmem:[#allocation52_spill] sm:$0xff]  ;;  %v4167_v6 = vld [vmem:[#allocation54_spill] sm:$0xff] }
 0x116   : > { %v1021_v11 = vmul.f32 0.5, %v2653_v28  ;;  %v4170_v28 = vld [vmem:[#allocation57_spill] sm:$0xff] }
 0x117   : > { %v3499_v23 = vadd.f32 %v1026_v25, %v1025_v18  ;;  %1297 = vmatpush.bf16.msra.mxu0 %v3214_v50  ;;  %v4168_v18 = vld [vmem:[#allocation55_spill] sm:$0xff]  ;;  %v4169_v25 = vld [vmem:[#allocation56_spill] sm:$0xff] }
 0x118   : > { %1335 = vmatpush.bf16.msra.mxu3 %v3208_v41  ;;  %1323 = vmatpush.bf16.msra.mxu2 %v3222_v61  ;;  %v1024_v37 = vadd.f32 0.5, %v1021_v11  ;;  %v4171_v11 = vld [vmem:[#allocation58_spill] sm:$0xff] }
 0x119   : > { %2654 = vtanh.f32 %v3499_v23  ;;  %1310 = vmatpush.bf16.msra.mxu1 %v3217_v54 }
 0x11b   : > { %1298 = vmatpush.bf16.msra.mxu0 %v3227_v7 }
 0x11c   : > { %1336 = vmatpush.bf16.msra.mxu3 %v3224_v62  ;;  %1324 = vmatpush.bf16.msra.mxu2 %v3236_v19 }
 0x11d   : > { %1311 = vmatpush.bf16.msra.mxu1 %v3230_v13 }
 0x11f   : > { %v2655_v45 = vpop.eup %2654 }
 0x120   : > { %v1029_v16 = vmul.f32 %v2655_v45, %v1024_v37  ;;  %1337 = vmatpush.bf16.msra.mxu3 %v3238_v20  ;;  %v4172_v37 = vld [vmem:[#allocation59_spill] sm:$0xff]  ;;  %v4173_v45 = vld [vmem:[#allocation60_spill] sm:$0xff] }
 0x122   : > { %v3513_v36 = vpack.c.bf16 %v1029_v16, %v1029_v16  ;;  %v4174_v16 = vld [vmem:[#allocation61_spill] sm:$0xff] }
 0x124   : > { %1231 = vmatmul.bf16.vlgmr.msrb.gmra.mxu0 %v3513_v36  ;;  %1244 = vmatmul.bf16.vlgmr.msrb.gmra.mxu1 %v3513_v36 }
 0x125   : > { %1257 = vmatmul.bf16.vlgmr.msrb.gmra.mxu2 %v3513_v36  ;;  %1270 = vmatmul.bf16.vlgmr.msrb.gmra.mxu3 %v3513_v36 }
 0x126   : > { %1350 = vmatpush.bf16.msrb.mxu0 %v3232_v14  ;;  %1363 = vmatpush.bf16.msrb.mxu1 %v3240_v26 }
 0x127   : > { %1376 = vmatpush.bf16.msrb.mxu2 %v3242_v27  ;;  %1389 = vmatpush.bf16.msrb.mxu3 %v3245_v31 }
 0x12a   : > { %1351 = vmatpush.bf16.msrb.mxu0 %v3249_v42  ;;  %1364 = vmatpush.bf16.msrb.mxu1 %v3255_v51 }
 0x12b   : > { %1377 = vmatpush.bf16.msrb.mxu2 %v3257_v53  ;;  %1390 = vmatpush.bf16.msrb.mxu3 %v3260_v57 }
 0x12e   : > { %1352 = vmatpush.bf16.msrb.mxu0 %v3263_v2  ;;  %1365 = vmatpush.bf16.msrb.mxu1 %v3267_v12  ;;  %v4189_v12 = vld [vmem:[#allocation101_spill] sm:$0xff] }
 0x12f   : > { %1378 = vmatpush.bf16.msrb.mxu2 %v4164_v1  ;;  %1391 = vmatpush.bf16.msrb.mxu3 %v4165_v55  ;;  %v4175_v1 = vld [vmem:[#allocation62_spill] sm:$0xff] }
 0x132   : > { %1353 = vmatpush.bf16.msrb.mxu0 %v4166_v58  ;;  %1366 = vmatpush.bf16.msrb.mxu1 %v4167_v6  ;;  %v4176_v6 = vld [vmem:[#allocation65_spill] sm:$0xff] }
 0x133   : > { %1379 = vmatpush.bf16.msrb.mxu2 %v4168_v18  ;;  %1392 = vmatpush.bf16.msrb.mxu3 %v4169_v25  ;;  %v4177_v18 = vld [vmem:[#allocation66_spill] sm:$0xff]  ;;  %v4178_v25 = vld [vmem:[#allocation67_spill] sm:$0xff] }
 0x136   : > { %1354 = vmatpush.bf16.msrb.mxu0 %v4170_v28  ;;  %1367 = vmatpush.bf16.msrb.mxu1 %v4171_v11  ;;  %v4179_v28 = vld [vmem:[#allocation68_spill] sm:$0xff]  ;;  %v4180_v11 = vld [vmem:[#allocation69_spill] sm:$0xff] }
 0x137   : > { %1380 = vmatpush.bf16.msrb.mxu2 %v4172_v37  ;;  %1393 = vmatpush.bf16.msrb.mxu3 %v4173_v45  ;;  %v4181_v37 = vld [vmem:[#allocation70_spill] sm:$0xff]  ;;  %v4182_v45 = vld [vmem:[#allocation71_spill] sm:$0xff] }
 0x13a   : > { %1355 = vmatpush.bf16.msrb.mxu0 %v4174_v16  ;;  %1368 = vmatpush.bf16.msrb.mxu1 %v4175_v1  ;;  %v4183_v16 = vld [vmem:[#allocation72_spill] sm:$0xff] }
 0x13b   : > { %1381 = vmatpush.bf16.msrb.mxu2 %v3305_v63  ;;  %1394 = vmatpush.bf16.msrb.mxu3 %v3308_v5  ;;  %v497_v5 = vld [vmem:[%s3915_s5] sm:$0xf] }
 0x13c   : > { %v3554_v63 = vperm.slane %v497_v5, 0  ;;  %v3562_v55 = vperm.slane %v497_v5, 3 }
 0x13e   : > { %1356 = vmatpush.bf16.msrb.mxu0 %v4176_v6  ;;  %1369 = vmatpush.bf16.msrb.mxu1 %v4177_v18  ;;  %4184 = vst [vmem:[#allocation114_spill] sm:$0xff] %v3554_v63  ;;  %v3556_v6 = vperm.slane %v497_v5, 1  ;;  %v756_v2 = vadd.f32 %v4189_v12, %v3562_v55 }
 0x13f   : > { %1382 = vmatpush.bf16.msrb.mxu2 %v4178_v25  ;;  %1395 = vmatpush.bf16.msrb.mxu3 %v4179_v28  ;;  %v4186_v25 = vld [vmem:[#allocation92_spill] sm:$0xff]  ;;  %v4187_v28 = vld [vmem:[#allocation95_spill] sm:$0xff] }
 0x140   : > { %4185 = vst [vmem:[#allocation115_spill] sm:$0xff] %v3556_v6  ;;  %v717_v18 = vadd.f32 %v4186_v25, %v3554_v63  ;;  %v4190_v25 = vld [vmem:[#allocation104_spill] sm:$0xff] }
 0x141   : > { %4188 = vst [vmem:[#allocation92_spill] sm:$0xff] %v3562_v55 }
 0x142   : > { %1357 = vmatpush.bf16.msrb.mxu0 %v4180_v11  ;;  %1370 = vmatpush.bf16.msrb.mxu1 %v4181_v37  ;;  %v730_v11 = vadd.f32 %v4187_v28, %v3556_v6 }
 0x143   : > { %1383 = vmatpush.bf16.msrb.mxu2 %v4182_v45  ;;  %1396 = vmatpush.bf16.msrb.mxu3 %v4183_v16  ;;  %v3564_v16 = vperm.slane %v497_v5, 2 }
 0x145   : > { %v743_v63 = vadd.f32 %v4190_v25, %v3564_v16 }
 0x1a1   : > { %v1232_v1 = vpop.f32.mrf.mxu0  ;;  %v1245_v37 = vpop.f32.mrf.mxu1 }
 0x1a2   : > { %v1233_v58 = vadd.f32 %v1232_v1, %v717_v18  ;;  %v1246_v45 = vadd.f32 %v1245_v37, %v730_v11  ;;  %v513_v37 = vld [vmem:[#allocation3 + $0x8] sm:$0xff] }
 0x1a4   : > { %2656 = vtanh.f32 %v1233_v58 }
 0x1a5   : > { %2658 = vtanh.f32 %v1246_v45 }
 0x1a8   : > { %v1258_v57 = vpop.f32.mrf.mxu2  ;;  %v1271_v53 = vpop.f32.mrf.mxu3 }
 0x1a9   : > { %v1272_v51 = vadd.f32 %v1271_v53, %v756_v2  ;;  %v1234_v28 = vpop.f32.mrf.mxu0  ;;  %v1247_v6 = vpop.f32.mrf.mxu1  ;;  %v1259_v18 = vadd.f32 %v1258_v57, %v743_v63 }
 0x1aa   : > { %v2657_v42 = vpop.eup %2656  ;;  %v4193_v6 = vld [vmem:[#allocation85_spill] sm:$0xff]  ;;  %v4198_v28 = vld [vmem:[#allocation91_spill] sm:$0xff] }
 0x1ab   : > { %v2659_v1 = vpop.eup %2658  ;;  %2660 = vtanh.f32 %v1272_v51  ;;  %v1279_v58 = vmul.f32 0.5, %v2657_v42  ;;  %v4191_v42 = vld [vmem:[#allocation83_spill] sm:$0xff] }
 0x1ac   : > { %v1280_v11 = vmul.f32 0.5, %v2659_v1  ;;  %2662 = vtanh.f32 %v1259_v18  ;;  %v4199_v1 = vld [vmem:[#allocation94_spill] sm:$0xff]  ;;  %v4200_v18 = vld [vmem:[#allocation96_spill] sm:$0xff] }
 0x1ad   : > { %v1282_v12 = vadd.f32 0.5, %v1279_v58  ;;  %v4202_v58 = vld [vmem:[#allocation98_spill] sm:$0xff] }
 0x1ae   : > { %v1283_v5 = vadd.f32 0.5, %v1280_v11  ;;  %v4201_v11 = vld [vmem:[#allocation97_spill] sm:$0xff] }
 0x1b0   : > { %v1260_v45 = vpop.f32.mrf.mxu2  ;;  %v1273_v31 = vpop.f32.mrf.mxu3  ;;  %v1285_v27 = vmul.f32 %v1283_v5, %v513_v37  ;;  %v4203_v5 = vld [vmem:[#allocation99_spill] sm:$0xff]  ;;  %v4204_v37 = vld [vmem:[#allocation100_spill] sm:$0xff] }
 0x1b1   : > { %v2661_v55 = vpop.eup %2660  ;;  %v4192_v31 = vld [vmem:[#allocation84_spill] sm:$0xff]  ;;  %v4205_v45 = vld [vmem:[#allocation102_spill] sm:$0xff] }
 0x1b2   : > { %v1286_v26 = vmul.f32 %v2661_v55, %v1282_v12  ;;  %v2663_v14 = vpop.eup %2662  ;;  %v4194_v55 = vld [vmem:[#allocation86_spill] sm:$0xff]  ;;  %v4206_v12 = vld [vmem:[#allocation103_spill] sm:$0xff] }
 0x1b3   : > { %v1281_v53 = vmul.f32 0.5, %v2663_v14  ;;  %v4197_v14 = vld [vmem:[#allocation90_spill] sm:$0xff] }
 0x1b4   : > { %v3570_v25 = vadd.f32 %v1286_v26, %v1285_v27  ;;  %v4195_v26 = vld [vmem:[#allocation87_spill] sm:$0xff]  ;;  %v4196_v27 = vld [vmem:[#allocation89_spill] sm:$0xff] }
 0x1b5   : > { %v1284_v2 = vadd.f32 0.5, %v1281_v53  ;;  %v4207_v53 = vld [vmem:[#allocation105_spill] sm:$0xff] }
 0x1b6   : > { %2664 = vtanh.f32 %v3570_v25 }
 0x1bc   : > { %v2665_v57 = vpop.eup %2664 }
 0x1bd   : > { %v1289_v63 = vmul.f32 %v2665_v57, %v1284_v2  ;;  %v4208_v2 = vld [vmem:[#allocation106_spill] sm:$0xff]  ;;  %v4209_v57 = vld [vmem:[#allocation107_spill] sm:$0xff] }
 0x1bf   : > { %v1290_v51 = vpack.c.bf16 %v1289_v63, %v1289_v63  ;;  %v4210_v63 = vld [vmem:[#allocation108_spill] sm:$0xff] }
 0x1c1   : > { %1299 = vmatmul.bf16.vlgmr.msra.gmra.mxu0 %v1290_v51  ;;  %1312 = vmatmul.bf16.vlgmr.msra.gmra.mxu1 %v1290_v51 }
 0x1c2   : > { %1325 = vmatmul.bf16.vlgmr.msra.gmra.mxu2 %v1290_v51  ;;  %1338 = vmatmul.bf16.vlgmr.msra.gmra.mxu3 %v1290_v51  ;;  %v4211_v51 = vld [vmem:[#allocation109_spill] sm:$0xff] }
 0x1c3   : > { %1422 = vmatpush.bf16.msra.mxu0 %v4191_v42  ;;  %1435 = vmatpush.bf16.msra.mxu1 %v4192_v31 }
 0x1c4   : > { %1448 = vmatpush.bf16.msra.mxu2 %v4193_v6  ;;  %1461 = vmatpush.bf16.msra.mxu3 %v4194_v55 }
 0x1c7   : > { %1423 = vmatpush.bf16.msra.mxu0 %v4195_v26  ;;  %1436 = vmatpush.bf16.msra.mxu1 %v4196_v27 }
 0x1c8   : > { %1449 = vmatpush.bf16.msra.mxu2 %v4197_v14  ;;  %1462 = vmatpush.bf16.msra.mxu3 %v4198_v28 }
 0x1cb   : > { %1424 = vmatpush.bf16.msra.mxu0 %v4199_v1  ;;  %1437 = vmatpush.bf16.msra.mxu1 %v4200_v18 }
 0x1cc   : > { %1450 = vmatpush.bf16.msra.mxu2 %v4201_v11  ;;  %1463 = vmatpush.bf16.msra.mxu3 %v4202_v58 }
 0x1cf   : > { %1425 = vmatpush.bf16.msra.mxu0 %v4203_v5  ;;  %1438 = vmatpush.bf16.msra.mxu1 %v4204_v37  ;;  %v4214_v37 = vld [vmem:[#allocation112_spill] sm:$0xff]  ;;  %v4215_v5 = vld [vmem:[#allocation113_spill] sm:$0xff] }
 0x1d0   : > { %1451 = vmatpush.bf16.msra.mxu2 %v4205_v45  ;;  %1464 = vmatpush.bf16.msra.mxu3 %v4206_v12  ;;  %v4212_v12 = vld [vmem:[#allocation110_spill] sm:$0xff]  ;;  %v4213_v45 = vld [vmem:[#allocation111_spill] sm:$0xff] }
 0x1d1   : > { %1358 = vmatmul.bf16.vlgmr.msrb.gmra.mxu0 %v3513_v36  ;;  %1371 = vmatmul.bf16.vlgmr.msrb.gmra.mxu1 %v3513_v36 }
 0x1d2   : > { %1384 = vmatmul.bf16.vlgmr.msrb.gmra.mxu2 %v3513_v36  ;;  %1397 = vmatmul.bf16.vlgmr.msrb.gmra.mxu3 %v3513_v36 }
 0x1d3   : > { %1426 = vmatpush.bf16.msra.mxu0 %v4207_v53  ;;  %1439 = vmatpush.bf16.msra.mxu1 %v4208_v2 }
 0x1d4   : > { %1452 = vmatpush.bf16.msra.mxu2 %v3430_v0  ;;  %1465 = vmatpush.bf16.msra.mxu3 %v4209_v57 }
 0x1d7   : > { %1427 = vmatpush.bf16.msra.mxu0 %v4210_v63  ;;  %1440 = vmatpush.bf16.msra.mxu1 %v4211_v51 }
 0x1d8   : > { %1453 = vmatpush.bf16.msra.mxu2 %v4212_v12  ;;  %1466 = vmatpush.bf16.msra.mxu3 %v4213_v45 }
 0x1db   : > { %1428 = vmatpush.bf16.msra.mxu0 %v4214_v37  ;;  %1441 = vmatpush.bf16.msra.mxu1 %v4215_v5 }
 0x1dc   : > { %1454 = vmatpush.bf16.msra.mxu2 %v3454_v46  ;;  %1467 = vmatpush.bf16.msra.mxu3 %v3457_v49 }
 0x1df   : > { %1429 = vmatpush.bf16.msra.mxu0 %v3462_v10  ;;  %1442 = vmatpush.bf16.msra.mxu1 %v3464_v43 }
 0x1e0   : > { %1455 = vmatpush.bf16.msra.mxu2 %v3466_v32  ;;  %1468 = vmatpush.bf16.msra.mxu3 %v3469_v47 }
 0x1e3   : > { %1490 = vmatpush.bf16.msrb.mxu0 %v3136_v24  ;;  %1503 = vmatpush.bf16.msrb.mxu1 %v3138_v29 }
 0x1e4   : > { %1516 = vmatpush.bf16.msrb.mxu2 %v3140_v30  ;;  %1529 = vmatpush.bf16.msrb.mxu3 %v3143_v34 }
 0x1e7   : > { %1491 = vmatpush.bf16.msrb.mxu0 %v3146_v39  ;;  %1504 = vmatpush.bf16.msrb.mxu1 %v3148_v40 }
 0x1e8   : > { %1517 = vmatpush.bf16.msrb.mxu2 %v3152_v44  ;;  %1530 = vmatpush.bf16.msrb.mxu3 %v3154_v48 }
 0x1eb   : > { %1492 = vmatpush.bf16.msrb.mxu0 %v3160_v52  ;;  %1505 = vmatpush.bf16.msrb.mxu1 %v3163_v56 }
 0x1ec   : > { %1518 = vmatpush.bf16.msrb.mxu2 %v3168_v59  ;;  %1531 = vmatpush.bf16.msrb.mxu3 %v3170_v60 }
 0x1ef   : > { %1493 = vmatpush.bf16.msrb.mxu0 %v3173_v3  ;;  %1506 = vmatpush.bf16.msrb.mxu1 %v3176_v4 }
 0x1f0   : > { %1519 = vmatpush.bf16.msrb.mxu2 %v3180_v8  ;;  %1532 = vmatpush.bf16.msrb.mxu3 %v3182_v9 }
 0x1f3   : > { %1494 = vmatpush.bf16.msrb.mxu0 %v3185_v15  ;;  %1507 = vmatpush.bf16.msrb.mxu1 %v3189_v17  ;;  %v4218_v15 = vld [vmem:[#allocation75_spill] sm:$0xff] }
 0x1f4   : > { %1520 = vmatpush.bf16.msrb.mxu2 %v3194_v21  ;;  %1533 = vmatpush.bf16.msrb.mxu3 %v3196_v22  ;;  %v4216_v22 = vld [vmem:[#allocation73_spill] sm:$0xff]  ;;  %v4217_v21 = vld [vmem:[#allocation74_spill] sm:$0xff] }
 0x1f7   : > { %1495 = vmatpush.bf16.msrb.mxu0 %v3199_v33  ;;  %1508 = vmatpush.bf16.msrb.mxu1 %v3202_v35 }
 0x1f8   : > { %1521 = vmatpush.bf16.msrb.mxu2 %v3206_v38  ;;  %1534 = vmatpush.bf16.msrb.mxu3 %v3208_v41 }
 0x1fb   : > { %1496 = vmatpush.bf16.msrb.mxu0 %v3214_v50  ;;  %1509 = vmatpush.bf16.msrb.mxu1 %v3217_v54 }
 0x1fc   : > { %1522 = vmatpush.bf16.msrb.mxu2 %v3222_v61  ;;  %1535 = vmatpush.bf16.msrb.mxu3 %v3224_v62 }
 0x1ff   : > { %1497 = vmatpush.bf16.msrb.mxu0 %v3227_v7  ;;  %1510 = vmatpush.bf16.msrb.mxu1 %v3230_v13 }
 0x200   : > { %1523 = vmatpush.bf16.msrb.mxu2 %v3236_v19  ;;  %1536 = vmatpush.bf16.msrb.mxu3 %v3238_v20 }
 0x23e   : > { %v3641_v36 = vpop.f32.mrf.mxu0  ;;  %v3643_v38 = vpop.f32.mrf.mxu1 }
 0x245   : > { %v3645_v41 = vpop.f32.mrf.mxu2  ;;  %v3647_v50 = vpop.f32.mrf.mxu3 }
 0x246   : > { %v1302_v54 = vpop.f32.mrf.mxu0  ;;  %v1315_v61 = vpop.f32.mrf.mxu1 }
 0x247   : > { %v4219_v54 = vld [vmem:[#allocation78_spill] sm:$0xff] }
 0x24d   : > { %v1328_v35 = vpop.f32.mrf.mxu2  ;;  %v1341_v62 = vpop.f32.mrf.mxu3 }
 0x24e   : > { %v1359_v33 = vpop.f32.mrf.mxu0  ;;  %v1372_v7 = vpop.f32.mrf.mxu1 }
 0x24f   : > { %v1402_v13 = vadd.f32 %v1359_v33, %v4216_v22  ;;  %v1403_v19 = vadd.f32 %v1372_v7, %v4217_v21 }
 0x251   : > { %2666 = vtanh.f32 %v1402_v13 }
 0x252   : > { %2668 = vtanh.f32 %v1403_v19 }
 0x255   : > { %v1385_v20 = vpop.f32.mrf.mxu2  ;;  %v1398_v17 = vpop.f32.mrf.mxu3 }
 0x256   : > { %v1405_v9 = vadd.f32 %v1398_v17, %v4218_v15  ;;  %v1361_v8 = vpop.f32.mrf.mxu0  ;;  %v1374_v4 = vpop.f32.mrf.mxu1  ;;  %v1404_v61 = vadd.f32 %v1385_v20, %v4219_v54  ;;  %v4222_v20 = vld [vmem:[#allocation43_spill] sm:$0xff]  ;;  %v4225_v54 = vld [vmem:[#allocation46_spill] sm:$0xff] }
 0x257   : > { %v2667_v3 = vpop.eup %2666 }
 0x258   : > { %v2669_v60 = vpop.eup %2668  ;;  %2670 = vtanh.f32 %v1405_v9  ;;  %v1410_v62 = vmul.f32 0.5, %v2667_v3  ;;  %v4221_v3 = vld [vmem:[#allocation42_spill] sm:$0xff] }
 0x259   : > { %v1411_v35 = vmul.f32 0.5, %v2669_v60  ;;  %2672 = vtanh.f32 %v1404_v61  ;;  %v4226_v61 = vld [vmem:[#allocation47_spill] sm:$0xff] }
 0x25a   : > { %v1413_v21 = vadd.f32 0.5, %v1410_v62  ;;  %v4228_v62 = vld [vmem:[#allocation49_spill] sm:$0xff] }
 0x25b   : > { %v1414_v59 = vadd.f32 0.5, %v1411_v35  ;;  %v4227_v35 = vld [vmem:[#allocation48_spill] sm:$0xff] }
 0x25d   : > { %v1387_v22 = vpop.f32.mrf.mxu2  ;;  %v1400_v33 = vpop.f32.mrf.mxu3  ;;  %v1416_v13 = vmul.f32 %v1414_v59, %v3499_v23  ;;  %v4220_v59 = vld [vmem:[#allocation39_spill] sm:$0xff]  ;;  %v4224_v23 = vld [vmem:[#allocation45_spill] sm:$0xff] }
 0x25e   : > { %v2671_v7 = vpop.eup %2670  ;;  %v4229_v22 = vld [vmem:[#allocation50_spill] sm:$0xff]  ;;  %v4230_v33 = vld [vmem:[#allocation51_spill] sm:$0xff] }
 0x25f   : > { %v1417_v19 = vmul.f32 %v2671_v7, %v1413_v21  ;;  %v2673_v56 = vpop.eup %2672  ;;  %v4231_v21 = vld [vmem:[#allocation52_spill] sm:$0xff]  ;;  %v4232_v7 = vld [vmem:[#allocation53_spill] sm:$0xff] }
 0x260   : > { %v1412_v4 = vmul.f32 0.5, %v2673_v56  ;;  %v4223_v56 = vld [vmem:[#allocation44_spill] sm:$0xff] }
 0x261   : > { %v3654_v15 = vadd.f32 %v1417_v19, %v1416_v13  ;;  %v4233_v13 = vld [vmem:[#allocation54_spill] sm:$0xff]  ;;  %v4234_v19 = vld [vmem:[#allocation55_spill] sm:$0xff] }
 0x262   : > { %v1415_v8 = vadd.f32 0.5, %v1412_v4  ;;  %v4235_v4 = vld [vmem:[#allocation56_spill] sm:$0xff] }
 0x263   : > { %2674 = vtanh.f32 %v3654_v15 }
 0x269   : > { %v2675_v17 = vpop.eup %2674 }
 0x26a   : > { %v1420_v60 = vmul.f32 %v2675_v17, %v1415_v8  ;;  %v4236_v8 = vld [vmem:[#allocation57_spill] sm:$0xff]  ;;  %v4237_v17 = vld [vmem:[#allocation58_spill] sm:$0xff] }
 0x26c   : > { %v3657_v9 = vpack.c.bf16 %v1420_v60, %v1420_v60  ;;  %v4238_v60 = vld [vmem:[#allocation59_spill] sm:$0xff] }
 0x26e   : > { %1430 = vmatmul.bf16.vlgmr.msra.gmra.mxu0 %v3657_v9  ;;  %1443 = vmatmul.bf16.vlgmr.msra.gmra.mxu1 %v3657_v9 }
 0x26f   : > { %1456 = vmatmul.bf16.vlgmr.msra.gmra.mxu2 %v3657_v9  ;;  %1469 = vmatmul.bf16.vlgmr.msra.gmra.mxu3 %v3657_v9 }
 0x270   : > { %1549 = vmatpush.bf16.msra.mxu0 %v4220_v59  ;;  %1562 = vmatpush.bf16.msra.mxu1 %v4221_v3 }
 0x271   : > { %1575 = vmatpush.bf16.msra.mxu2 %v4222_v20  ;;  %1588 = vmatpush.bf16.msra.mxu3 %v4223_v56 }
 0x274   : > { %1550 = vmatpush.bf16.msra.mxu0 %v4224_v23  ;;  %1563 = vmatpush.bf16.msra.mxu1 %v4225_v54 }
 0x275   : > { %1576 = vmatpush.bf16.msra.mxu2 %v4226_v61  ;;  %1589 = vmatpush.bf16.msra.mxu3 %v4227_v35 }
 0x278   : > { %1551 = vmatpush.bf16.msra.mxu0 %v4228_v62  ;;  %1564 = vmatpush.bf16.msra.mxu1 %v4229_v22  ;;  %v4239_v62 = vld [vmem:[#allocation60_spill] sm:$0xff]  ;;  %v4240_v22 = vld [vmem:[#allocation61_spill] sm:$0xff] }
 0x279   : > { %1577 = vmatpush.bf16.msra.mxu2 %v4230_v33  ;;  %1590 = vmatpush.bf16.msra.mxu3 %v4231_v21  ;;  %v4241_v33 = vld [vmem:[#allocation62_spill] sm:$0xff]  ;;  %v4242_v21 = vld [vmem:[#allocation63_spill] sm:$0xff] }
 0x27c   : > { %1552 = vmatpush.bf16.msra.mxu0 %v4232_v7  ;;  %1565 = vmatpush.bf16.msra.mxu1 %v4233_v13  ;;  %v4243_v7 = vld [vmem:[#allocation64_spill] sm:$0xff]  ;;  %v4244_v13 = vld [vmem:[#allocation65_spill] sm:$0xff] }
 0x27d   : > { %1578 = vmatpush.bf16.msra.mxu2 %v4234_v19  ;;  %1591 = vmatpush.bf16.msra.mxu3 %v4235_v4  ;;  %v4245_v19 = vld [vmem:[#allocation66_spill] sm:$0xff]  ;;  %v4246_v4 = vld [vmem:[#allocation67_spill] sm:$0xff] }
 0x280   : > { %1553 = vmatpush.bf16.msra.mxu0 %v4236_v8  ;;  %1566 = vmatpush.bf16.msra.mxu1 %v4237_v17  ;;  %v4247_v8 = vld [vmem:[#allocation68_spill] sm:$0xff]  ;;  %v4248_v17 = vld [vmem:[#allocation69_spill] sm:$0xff] }
 0x281   : > { %1579 = vmatpush.bf16.msra.mxu2 %v4238_v60  ;;  %1592 = vmatpush.bf16.msra.mxu3 %v4239_v62  ;;  %v4249_v60 = vld [vmem:[#allocation70_spill] sm:$0xff]  ;;  %v4250_v62 = vld [vmem:[#allocation71_spill] sm:$0xff] }
 0x284   : > { %1554 = vmatpush.bf16.msra.mxu0 %v4240_v22  ;;  %1567 = vmatpush.bf16.msra.mxu1 %v4241_v33  ;;  %v4251_v22 = vld [vmem:[#allocation72_spill] sm:$0xff]  ;;  %v4252_v33 = vld [vmem:[#allocation114_spill] sm:$0xff] }
 0x285   : > { %1580 = vmatpush.bf16.msra.mxu2 %v4242_v21  ;;  %1593 = vmatpush.bf16.msra.mxu3 %v4243_v7  ;;  %v1301_v21 = vadd.f32 %v3641_v36, %v4252_v33  ;;  %v4253_v7 = vld [vmem:[#allocation115_spill] sm:$0xff] }
 0x288   : > { %1555 = vmatpush.bf16.msra.mxu0 %v4244_v13  ;;  %1568 = vmatpush.bf16.msra.mxu1 %v4245_v19  ;;  %v1314_v13 = vadd.f32 %v3643_v38, %v4253_v7 }
 0x289   : > { %1581 = vmatpush.bf16.msra.mxu2 %v4246_v4  ;;  %1594 = vmatpush.bf16.msra.mxu3 %v4247_v8  ;;  %v4254_v8 = vld [vmem:[#allocation92_spill] sm:$0xff] }
 0x28c   : > { %1556 = vmatpush.bf16.msra.mxu0 %v4248_v17  ;;  %1569 = vmatpush.bf16.msra.mxu1 %v4249_v60  ;;  %v1340_v17 = vadd.f32 %v3647_v50, %v4254_v8 }
 0x28d   : > { %1582 = vmatpush.bf16.msra.mxu2 %v4250_v62  ;;  %1595 = vmatpush.bf16.msra.mxu3 %v4251_v22  ;;  %v1327_v22 = vadd.f32 %v3645_v41, %v3564_v16 }
 0x2eb   : > { %v1431_v35 = vpop.f32.mrf.mxu0  ;;  %v1444_v19 = vpop.f32.mrf.mxu1 }
 0x2ec   : > { %v1432_v61 = vadd.f32 %v1431_v35, %v1301_v21  ;;  %v1445_v4 = vadd.f32 %v1444_v19, %v1314_v13 }
 0x2ee   : > { %2676 = vtanh.f32 %v1432_v61 }
 0x2ef   : > { %2678 = vtanh.f32 %v1445_v4 }
 0x2f2   : > { %v1457_v60 = vpop.f32.mrf.mxu2  ;;  %v1470_v54 = vpop.f32.mrf.mxu3 }
 0x2f3   : > { %v1471_v62 = vadd.f32 %v1470_v54, %v1340_v17  ;;  %v1433_v23 = vpop.f32.mrf.mxu0  ;;  %v1446_v36 = vpop.f32.mrf.mxu1  ;;  %v1458_v38 = vadd.f32 %v1457_v60, %v1327_v22  ;;  %v4270_v17 = vld [vmem:[#allocation29_spill] sm:$0xff]  ;;  %v4271_v60 = vld [vmem:[#allocation30_spill] sm:$0xff] }
 0x2f4   : > { %v2677_v33 = vpop.eup %2676  ;;  %v4272_v36 = vld [vmem:[#allocation31_spill] sm:$0xff] }
 0x2f5   : > { %v2679_v56 = vpop.eup %2678  ;;  %2680 = vtanh.f32 %v1471_v62  ;;  %v1478_v35 = vmul.f32 0.5, %v2677_v33  ;;  %v4257_v33 = vld [vmem:[#allocation102_spill] sm:$0xff] }
 0x2f6   : > { %v1479_v7 = vmul.f32 0.5, %v2679_v56  ;;  %2682 = vtanh.f32 %v1458_v38  ;;  %v4273_v38 = vld [vmem:[#allocation32_spill] sm:$0xff] }
 0x2f7   : > { %v1481_v19 = vadd.f32 0.5, %v1478_v35  ;;  %v4274_v35 = vld [vmem:[#allocation33_spill] sm:$0xff] }
 0x2f8   : > { %v1482_v21 = vadd.f32 0.5, %v1479_v7  ;;  %v4258_v7 = vld [vmem:[#allocation103_spill] sm:$0xff] }
 0x2fa   : > { %v1459_v61 = vpop.f32.mrf.mxu2  ;;  %v1472_v13 = vpop.f32.mrf.mxu3  ;;  %v1484_v4 = vmul.f32 %v1482_v21, %v3570_v25  ;;  %v4255_v25 = vld [vmem:[#allocation99_spill] sm:$0xff]  ;;  %v4275_v21 = vld [vmem:[#allocation34_spill] sm:$0xff] }
 0x2fb   : > { %v2681_v50 = vpop.eup %2680  ;;  %v4276_v61 = vld [vmem:[#allocation35_spill] sm:$0xff]  ;;  %v4277_v13 = vld [vmem:[#allocation36_spill] sm:$0xff] }
 0x2fc   : > { %v1485_v8 = vmul.f32 %v2681_v50, %v1481_v19  ;;  %v2683_v20 = vpop.eup %2682  ;;  %v4278_v19 = vld [vmem:[#allocation37_spill] sm:$0xff]  ;;  %v4279_v50 = vld [vmem:[#allocation38_spill] sm:$0xff] }
 0x2fd   : > { %v1480_v23 = vmul.f32 0.5, %v2683_v20  ;;  %v4256_v20 = vld [vmem:[#allocation100_spill] sm:$0xff] }
 0x2fe   : > { %v3704_v41 = vadd.f32 %v1485_v8, %v1484_v4  ;;  %v4260_v8 = vld [vmem:[#allocation19_spill] sm:$0xff]  ;;  %v4280_v4 = vld [vmem:[#allocation40_spill] sm:$0xff] }
 0x2ff   : > { %v1483_v54 = vadd.f32 0.5, %v1480_v23  ;;  %v4281_v23 = vld [vmem:[#allocation41_spill] sm:$0xff] }
 0x300   : > { %2684 = vtanh.f32 %v3704_v41 }
 0x306   : > { %v2685_v22 = vpop.eup %2684 }
 0x307   : > { %v1488_v56 = vmul.f32 %v2685_v22, %v1483_v54 }
 0x309   : > { %v1489_v62 = vpack.c.bf16 %v1488_v56, %v1488_v56 }
 0x30b   : > { %1498 = vmatmul.bf16.vlgmr.msrb.gmra.mxu0 %v1489_v62  ;;  %1511 = vmatmul.bf16.vlgmr.msrb.gmra.mxu1 %v1489_v62 }
 0x30c   : > { %1524 = vmatmul.bf16.vlgmr.msrb.gmra.mxu2 %v1489_v62  ;;  %1537 = vmatmul.bf16.vlgmr.msrb.gmra.mxu3 %v1489_v62 }
 0x30d   : > { %1621 = vmatpush.bf16.msrb.mxu0 %v4191_v42  ;;  %1634 = vmatpush.bf16.msrb.mxu1 %v4192_v31 }
 0x30e   : > { %1647 = vmatpush.bf16.msrb.mxu2 %v4193_v6  ;;  %1660 = vmatpush.bf16.msrb.mxu3 %v4194_v55 }
 0x311   : > { %1622 = vmatpush.bf16.msrb.mxu0 %v4195_v26  ;;  %1635 = vmatpush.bf16.msrb.mxu1 %v4196_v27 }
 0x312   : > { %1648 = vmatpush.bf16.msrb.mxu2 %v4197_v14  ;;  %1661 = vmatpush.bf16.msrb.mxu3 %v4198_v28 }
 0x315   : > { %1623 = vmatpush.bf16.msrb.mxu0 %v4199_v1  ;;  %1636 = vmatpush.bf16.msrb.mxu1 %v4200_v18 }
 0x316   : > { %1649 = vmatpush.bf16.msrb.mxu2 %v4201_v11  ;;  %1662 = vmatpush.bf16.msrb.mxu3 %v4202_v58 }
 0x319   : > { %1624 = vmatpush.bf16.msrb.mxu0 %v4255_v25  ;;  %1637 = vmatpush.bf16.msrb.mxu1 %v4256_v20 }
 0x31a   : > { %1650 = vmatpush.bf16.msrb.mxu2 %v4257_v33  ;;  %1663 = vmatpush.bf16.msrb.mxu3 %v4258_v7 }
 0x31b   : > { %1557 = vmatmul.bf16.vlgmr.msra.gmra.mxu0 %v3657_v9  ;;  %1570 = vmatmul.bf16.vlgmr.msra.gmra.mxu1 %v3657_v9 }
 0x31c   : > { %1583 = vmatmul.bf16.vlgmr.msra.gmra.mxu2 %v3657_v9  ;;  %1596 = vmatmul.bf16.vlgmr.msra.gmra.mxu3 %v3657_v9  ;;  %v4259_v9 = vld [vmem:[#allocation18_spill] sm:$0xff] }
 0x31d   : > { %1625 = vmatpush.bf16.msrb.mxu0 %v4207_v53  ;;  %1638 = vmatpush.bf16.msrb.mxu1 %v4208_v2 }
 0x31e   : > { %1651 = vmatpush.bf16.msrb.mxu2 %v3430_v0  ;;  %1664 = vmatpush.bf16.msrb.mxu3 %v4209_v57 }
 0x321   : > { %1626 = vmatpush.bf16.msrb.mxu0 %v4210_v63  ;;  %1639 = vmatpush.bf16.msrb.mxu1 %v4211_v51 }
 0x322   : > { %1652 = vmatpush.bf16.msrb.mxu2 %v4212_v12  ;;  %1665 = vmatpush.bf16.msrb.mxu3 %v4213_v45 }
 0x325   : > { %1627 = vmatpush.bf16.msrb.mxu0 %v4214_v37  ;;  %1640 = vmatpush.bf16.msrb.mxu1 %v4215_v5 }
 0x326   : > { %1653 = vmatpush.bf16.msrb.mxu2 %v3454_v46  ;;  %1666 = vmatpush.bf16.msrb.mxu3 %v3457_v49 }
 0x329   : > { %1628 = vmatpush.bf16.msrb.mxu0 %v3462_v10  ;;  %1641 = vmatpush.bf16.msrb.mxu1 %v3464_v43 }
 0x32a   : > { %1654 = vmatpush.bf16.msrb.mxu2 %v3466_v32  ;;  %1667 = vmatpush.bf16.msrb.mxu3 %v3469_v47 }
 0x32d   : > { %1689 = vmatpush.bf16.msra.mxu0 %v3136_v24  ;;  %1702 = vmatpush.bf16.msra.mxu1 %v3138_v29  ;;  %v4261_v24 = vld [vmem:[#allocation20_spill] sm:$0xff]  ;;  %v4262_v29 = vld [vmem:[#allocation21_spill] sm:$0xff] }
 0x32e   : > { %1715 = vmatpush.bf16.msra.mxu2 %v3140_v30  ;;  %1728 = vmatpush.bf16.msra.mxu3 %v3143_v34  ;;  %v4263_v30 = vld [vmem:[#allocation22_spill] sm:$0xff]  ;;  %v4264_v34 = vld [vmem:[#allocation23_spill] sm:$0xff] }
 0x331   : > { %1690 = vmatpush.bf16.msra.mxu0 %v3146_v39  ;;  %1703 = vmatpush.bf16.msra.mxu1 %v3148_v40  ;;  %v4265_v39 = vld [vmem:[#allocation24_spill] sm:$0xff]  ;;  %v4266_v40 = vld [vmem:[#allocation25_spill] sm:$0xff] }
 0x332   : > { %1716 = vmatpush.bf16.msra.mxu2 %v3152_v44  ;;  %1729 = vmatpush.bf16.msra.mxu3 %v3154_v48  ;;  %v4267_v44 = vld [vmem:[#allocation26_spill] sm:$0xff]  ;;  %v4268_v48 = vld [vmem:[#allocation27_spill] sm:$0xff] }
 0x335   : > { %1691 = vmatpush.bf16.msra.mxu0 %v3160_v52  ;;  %1704 = vmatpush.bf16.msra.mxu1 %v4259_v9  ;;  %v4269_v52 = vld [vmem:[#allocation28_spill] sm:$0xff] }
 0x336   : > { %1717 = vmatpush.bf16.msra.mxu2 %v4260_v8  ;;  %1730 = vmatpush.bf16.msra.mxu3 %v4261_v24 }
 0x339   : > { %1692 = vmatpush.bf16.msra.mxu0 %v4262_v29  ;;  %1705 = vmatpush.bf16.msra.mxu1 %v4263_v30 }
 0x33a   : > { %1718 = vmatpush.bf16.msra.mxu2 %v4264_v34  ;;  %1731 = vmatpush.bf16.msra.mxu3 %v4265_v39  ;;  %v4282_v39 = vld [vmem:[#allocation76_spill] sm:$0xff] }
 0x33d   : > { %1693 = vmatpush.bf16.msra.mxu0 %v4266_v40  ;;  %1706 = vmatpush.bf16.msra.mxu1 %v4267_v44  ;;  %v4283_v44 = vld [vmem:[#allocation77_spill] sm:$0xff] }
 0x33e   : > { %1719 = vmatpush.bf16.msra.mxu2 %v4268_v48  ;;  %1732 = vmatpush.bf16.msra.mxu3 %v4269_v52 }
 0x341   : > { %1694 = vmatpush.bf16.msra.mxu0 %v4270_v17  ;;  %1707 = vmatpush.bf16.msra.mxu1 %v4271_v60  ;;  %v4284_v60 = vld [vmem:[#allocation79_spill] sm:$0xff] }
 0x342   : > { %1720 = vmatpush.bf16.msra.mxu2 %v4272_v36  ;;  %1733 = vmatpush.bf16.msra.mxu3 %v4273_v38 }
 0x345   : > { %1695 = vmatpush.bf16.msra.mxu0 %v4274_v35  ;;  %1708 = vmatpush.bf16.msra.mxu1 %v4275_v21 }
 0x346   : > { %1721 = vmatpush.bf16.msra.mxu2 %v4276_v61  ;;  %1734 = vmatpush.bf16.msra.mxu3 %v4277_v13  ;;  %v4285_v13 = vld [vmem:[#allocation82_spill] sm:$0xff] }
 0x349   : > { %1696 = vmatpush.bf16.msra.mxu0 %v4278_v19  ;;  %1709 = vmatpush.bf16.msra.mxu1 %v4279_v50 }
 0x34a   : > { %1722 = vmatpush.bf16.msra.mxu2 %v4280_v4  ;;  %1735 = vmatpush.bf16.msra.mxu3 %v4281_v23 }
 0x388   : > { %v3775_v54 = vpop.f32.mrf.mxu0  ;;  %v3777_v22 = vpop.f32.mrf.mxu1 }
 0x38f   : > { %v3779_v56 = vpop.f32.mrf.mxu2  ;;  %v3781_v62 = vpop.f32.mrf.mxu3 }
 0x390   : > { %v1501_v9 = vpop.f32.mrf.mxu0  ;;  %v1514_v8 = vpop.f32.mrf.mxu1 }
 0x397   : > { %v1527_v24 = vpop.f32.mrf.mxu2  ;;  %v1540_v29 = vpop.f32.mrf.mxu3 }
 0x398   : > { %v1558_v30 = vpop.f32.mrf.mxu0  ;;  %v1571_v34 = vpop.f32.mrf.mxu1 }
 0x399   : > { %v1601_v40 = vadd.f32 %v1558_v30, %v4282_v39  ;;  %v1602_v48 = vadd.f32 %v1571_v34, %v4283_v44 }
 0x39b   : > { %2686 = vtanh.f32 %v1601_v40 }
 0x39c   : > { %2688 = vtanh.f32 %v1602_v48 }
 0x39f   : > { %v1584_v52 = vpop.f32.mrf.mxu2  ;;  %v1597_v17 = vpop.f32.mrf.mxu3 }
 0x3a0   : > { %v1604_v36 = vadd.f32 %v1597_v17, %v4284_v60  ;;  %v1560_v38 = vpop.f32.mrf.mxu0  ;;  %v1573_v35 = vpop.f32.mrf.mxu1  ;;  %v1603_v19 = vadd.f32 %v1584_v52, %v4285_v13  ;;  %v4292_v13 = vld [vmem:[#allocation49_spill] sm:$0xff] }
 0x3a1   : > { %v2687_v21 = vpop.eup %2686  ;;  %v4288_v38 = vld [vmem:[#allocation45_spill] sm:$0xff]  ;;  %v4289_v35 = vld [vmem:[#allocation46_spill] sm:$0xff] }
 0x3a2   : > { %v2689_v61 = vpop.eup %2688  ;;  %2690 = vtanh.f32 %v1604_v36  ;;  %v1609_v4 = vmul.f32 0.5, %v2687_v21  ;;  %v4287_v36 = vld [vmem:[#allocation44_spill] sm:$0xff]  ;;  %v4290_v21 = vld [vmem:[#allocation47_spill] sm:$0xff] }
 0x3a3   : > { %v1610_v50 = vmul.f32 0.5, %v2689_v61  ;;  %2692 = vtanh.f32 %v1603_v19  ;;  %v4291_v61 = vld [vmem:[#allocation48_spill] sm:$0xff]  ;;  %v4293_v19 = vld [vmem:[#allocation50_spill] sm:$0xff] }
 0x3a4   : > { %v1612_v24 = vadd.f32 0.5, %v1609_v4  ;;  %v4297_v4 = vld [vmem:[#allocation54_spill] sm:$0xff] }
 0x3a5   : > { %v1613_v23 = vadd.f32 0.5, %v1610_v50  ;;  %v4294_v50 = vld [vmem:[#allocation51_spill] sm:$0xff] }
 0x3a7   : > { %v1586_v9 = vpop.f32.mrf.mxu2  ;;  %v1599_v8 = vpop.f32.mrf.mxu3  ;;  %v1615_v30 = vmul.f32 %v1613_v23, %v3654_v15  ;;  %v4286_v15 = vld [vmem:[#allocation43_spill] sm:$0xff] }
 0x3a8   : > { %v2691_v29 = vpop.eup %2690  ;;  %v4298_v23 = vld [vmem:[#allocation55_spill] sm:$0xff]  ;;  %v4299_v9 = vld [vmem:[#allocation56_spill] sm:$0xff]  ;;  %v4300_v8 = vld [vmem:[#allocation57_spill] sm:$0xff] }
 0x3a9   : > { %v1616_v34 = vmul.f32 %v2691_v29, %v1612_v24  ;;  %v2693_v39 = vpop.eup %2692  ;;  %v4301_v24 = vld [vmem:[#allocation58_spill] sm:$0xff]  ;;  %v4302_v29 = vld [vmem:[#allocation59_spill] sm:$0xff] }
 0x3aa   : > { %v1611_v44 = vmul.f32 0.5, %v2693_v39  ;;  %v4305_v39 = vld [vmem:[#allocation62_spill] sm:$0xff] }
 0x3ab   : > { %v3788_v40 = vadd.f32 %v1616_v34, %v1615_v30  ;;  %v4303_v30 = vld [vmem:[#allocation60_spill] sm:$0xff]  ;;  %v4304_v34 = vld [vmem:[#allocation61_spill] sm:$0xff] }
 0x3ac   : > { %v1614_v48 = vadd.f32 0.5, %v1611_v44  ;;  %v4306_v44 = vld [vmem:[#allocation63_spill] sm:$0xff] }
 0x3ad   : > { %2694 = vtanh.f32 %v3788_v40 }
 0x3b3   : > { %v2695_v52 = vpop.eup %2694 }
 0x3b4   : > { %v1619_v17 = vmul.f32 %v2695_v52, %v1614_v48  ;;  %v4307_v48 = vld [vmem:[#allocation64_spill] sm:$0xff]  ;;  %v4308_v52 = vld [vmem:[#allocation65_spill] sm:$0xff] }
 0x3b6   : > { %v3791_v60 = vpack.c.bf16 %v1619_v17, %v1619_v17  ;;  %v4309_v17 = vld [vmem:[#allocation66_spill] sm:$0xff] }
 0x3b8   : > { %1629 = vmatmul.bf16.vlgmr.msrb.gmra.mxu0 %v3791_v60  ;;  %1642 = vmatmul.bf16.vlgmr.msrb.gmra.mxu1 %v3791_v60 }
 0x3b9   : > { %1655 = vmatmul.bf16.vlgmr.msrb.gmra.mxu2 %v3791_v60  ;;  %1668 = vmatmul.bf16.vlgmr.msrb.gmra.mxu3 %v3791_v60 }
 0x3ba   : > { %1748 = vmatpush.bf16.msrb.mxu0 %v4220_v59  ;;  %1761 = vmatpush.bf16.msrb.mxu1 %v4221_v3  ;;  %v4295_v59 = vld [vmem:[#allocation52_spill] sm:$0xff]  ;;  %v4296_v3 = vld [vmem:[#allocation53_spill] sm:$0xff] }
 0x3bb   : > { %1774 = vmatpush.bf16.msrb.mxu2 %v4286_v15  ;;  %1787 = vmatpush.bf16.msrb.mxu3 %v4287_v36  ;;  %v4310_v15 = vld [vmem:[#allocation67_spill] sm:$0xff]  ;;  %v4311_v36 = vld [vmem:[#allocation68_spill] sm:$0xff] }
 0x3be   : > { %1749 = vmatpush.bf16.msrb.mxu0 %v4288_v38  ;;  %1762 = vmatpush.bf16.msrb.mxu1 %v4289_v35  ;;  %v4312_v38 = vld [vmem:[#allocation69_spill] sm:$0xff]  ;;  %v4313_v35 = vld [vmem:[#allocation70_spill] sm:$0xff] }
 0x3bf   : > { %1775 = vmatpush.bf16.msrb.mxu2 %v4290_v21  ;;  %1788 = vmatpush.bf16.msrb.mxu3 %v4291_v61  ;;  %v4314_v21 = vld [vmem:[#allocation71_spill] sm:$0xff]  ;;  %v4315_v61 = vld [vmem:[#allocation72_spill] sm:$0xff] }
 0x3c2   : > { %1750 = vmatpush.bf16.msrb.mxu0 %v4292_v13  ;;  %1763 = vmatpush.bf16.msrb.mxu1 %v4293_v19  ;;  %v4316_v13 = vld [vmem:[#allocation114_spill] sm:$0xff] }
 0x3c3   : > { %1776 = vmatpush.bf16.msrb.mxu2 %v4294_v50  ;;  %1789 = vmatpush.bf16.msrb.mxu3 %v4295_v59  ;;  %v1500_v19 = vadd.f32 %v3775_v54, %v4316_v13  ;;  %v4317_v50 = vld [vmem:[#allocation115_spill] sm:$0xff] }
 0x3c4   : > { %v1513_v59 = vadd.f32 %v3777_v22, %v4317_v50 }
 0x3c6   : > { %1751 = vmatpush.bf16.msrb.mxu0 %v4296_v3  ;;  %1764 = vmatpush.bf16.msrb.mxu1 %v4297_v4 }
 0x3c7   : > { %1777 = vmatpush.bf16.msrb.mxu2 %v4298_v23  ;;  %1790 = vmatpush.bf16.msrb.mxu3 %v4299_v9 }
 0x3ca   : > { %1752 = vmatpush.bf16.msrb.mxu0 %v4300_v8  ;;  %1765 = vmatpush.bf16.msrb.mxu1 %v4301_v24  ;;  %v4318_v8 = vld [vmem:[#allocation92_spill] sm:$0xff] }
 0x3cb   : > { %1778 = vmatpush.bf16.msrb.mxu2 %v4302_v29  ;;  %1791 = vmatpush.bf16.msrb.mxu3 %v4303_v30  ;;  %v1539_v24 = vadd.f32 %v3781_v62, %v4318_v8 }
 0x3ce   : > { %1753 = vmatpush.bf16.msrb.mxu0 %v4304_v34  ;;  %1766 = vmatpush.bf16.msrb.mxu1 %v4305_v39  ;;  %v1526_v34 = vadd.f32 %v3779_v56, %v3564_v16 }
 0x3cf   : > { %1779 = vmatpush.bf16.msrb.mxu2 %v4306_v44  ;;  %1792 = vmatpush.bf16.msrb.mxu3 %v4307_v48 }
 0x3d2   : > { %1754 = vmatpush.bf16.msrb.mxu0 %v4308_v52  ;;  %1767 = vmatpush.bf16.msrb.mxu1 %v4309_v17 }
 0x3d3   : > { %1780 = vmatpush.bf16.msrb.mxu2 %v4310_v15  ;;  %1793 = vmatpush.bf16.msrb.mxu3 %v4311_v36 }
 0x3d6   : > { %1755 = vmatpush.bf16.msrb.mxu0 %v4312_v38  ;;  %1768 = vmatpush.bf16.msrb.mxu1 %v4313_v35 }
 0x3d7   : > { %1781 = vmatpush.bf16.msrb.mxu2 %v4314_v21  ;;  %1794 = vmatpush.bf16.msrb.mxu3 %v4315_v61 }
 0x435   : > { %v1630_v3 = vpop.f32.mrf.mxu0  ;;  %v1643_v4 = vpop.f32.mrf.mxu1 }
 0x436   : > { %v1631_v23 = vadd.f32 %v1630_v3, %v1500_v19  ;;  %v1644_v9 = vadd.f32 %v1643_v4, %v1513_v59 }
 0x438   : > { %2696 = vtanh.f32 %v1631_v23 }
 0x439   : > { %2698 = vtanh.f32 %v1644_v9 }
 0x43c   : > { %v1656_v29 = vpop.f32.mrf.mxu2  ;;  %v1669_v30 = vpop.f32.mrf.mxu3 }
 0x43d   : > { %v1670_v39 = vadd.f32 %v1669_v30, %v1539_v24  ;;  %v1632_v44 = vpop.f32.mrf.mxu0  ;;  %v1645_v54 = vpop.f32.mrf.mxu1  ;;  %v1657_v22 = vadd.f32 %v1656_v29, %v1526_v34 }
 0x43e   : > { %v2697_v48 = vpop.eup %2696 }
 0x43f   : > { %v2699_v52 = vpop.eup %2698  ;;  %2700 = vtanh.f32 %v1670_v39  ;;  %v1677_v15 = vmul.f32 0.5, %v2697_v48 }
 0x440   : > { %v1678_v17 = vmul.f32 0.5, %v2699_v52  ;;  %2702 = vtanh.f32 %v1657_v22 }
 0x441   : > { %v1680_v21 = vadd.f32 0.5, %v1677_v15 }
 0x442   : > { %v1681_v36 = vadd.f32 0.5, %v1678_v17 }
 0x444   : > { %v1658_v38 = vpop.f32.mrf.mxu2  ;;  %v1671_v35 = vpop.f32.mrf.mxu3  ;;  %v1683_v61 = vmul.f32 %v1681_v36, %v3704_v41 }
 0x445   : > { %v2701_v62 = vpop.eup %2700 }
 0x446   : > { %v1684_v19 = vmul.f32 %v2701_v62, %v1680_v21  ;;  %v2703_v59 = vpop.eup %2702 }
 0x447   : > { %v1679_v3 = vmul.f32 0.5, %v2703_v59 }
 0x448   : > { %v3838_v56 = vadd.f32 %v1684_v19, %v1683_v61 }
 0x449   : > { %v1682_v4 = vadd.f32 0.5, %v1679_v3 }
 0x44a   : > { %2704 = vtanh.f32 %v3838_v56 }
 0x450   : > { %v2705_v23 = vpop.eup %2704 }
 0x451   : > { %v1687_v9 = vmul.f32 %v2705_v23, %v1682_v4 }
 0x453   : > { %v1688_v24 = vpack.c.bf16 %v1687_v9, %v1687_v9 }
 0x455   : > { %1697 = vmatmul.bf16.vlgmr.msra.gmra.mxu0 %v1688_v24  ;;  %1710 = vmatmul.bf16.vlgmr.msra.gmra.mxu1 %v1688_v24 }
 0x456   : > { %1723 = vmatmul.bf16.vlgmr.msra.gmra.mxu2 %v1688_v24  ;;  %1736 = vmatmul.bf16.vlgmr.msra.gmra.mxu3 %v1688_v24 }
 0x457   : > { %1820 = vmatpush.bf16.msra.mxu0 %v4191_v42  ;;  %1833 = vmatpush.bf16.msra.mxu1 %v4192_v31 }
 0x458   : > { %1846 = vmatpush.bf16.msra.mxu2 %v4193_v6  ;;  %1859 = vmatpush.bf16.msra.mxu3 %v4194_v55 }
 0x45b   : > { %1821 = vmatpush.bf16.msra.mxu0 %v4195_v26  ;;  %1834 = vmatpush.bf16.msra.mxu1 %v4196_v27 }
 0x45c   : > { %1847 = vmatpush.bf16.msra.mxu2 %v4197_v14  ;;  %1860 = vmatpush.bf16.msra.mxu3 %v4198_v28 }
 0x45f   : > { %1822 = vmatpush.bf16.msra.mxu0 %v4199_v1  ;;  %1835 = vmatpush.bf16.msra.mxu1 %v4200_v18  ;;  %v4319_v1 = vld [vmem:[#allocation80_spill] sm:$0xff]  ;;  %v4320_v18 = vld [vmem:[#allocation81_spill] sm:$0xff] }
 0x460   : > { %1848 = vmatpush.bf16.msra.mxu2 %v4201_v11  ;;  %1861 = vmatpush.bf16.msra.mxu3 %v4202_v58  ;;  %v4321_v11 = vld [vmem:[#allocation88_spill] sm:$0xff] }
 0x463   : > { %1823 = vmatpush.bf16.msra.mxu0 %v4255_v25  ;;  %1836 = vmatpush.bf16.msra.mxu1 %v4256_v20 }
 0x464   : > { %1849 = vmatpush.bf16.msra.mxu2 %v4257_v33  ;;  %1862 = vmatpush.bf16.msra.mxu3 %v4258_v7 }
 0x465   : > { %1756 = vmatmul.bf16.vlgmr.msrb.gmra.mxu0 %v3791_v60  ;;  %1769 = vmatmul.bf16.vlgmr.msrb.gmra.mxu1 %v3791_v60 }
 0x466   : > { %1782 = vmatmul.bf16.vlgmr.msrb.gmra.mxu2 %v3791_v60  ;;  %1795 = vmatmul.bf16.vlgmr.msrb.gmra.mxu3 %v3791_v60 }
 0x467   : > { %1824 = vmatpush.bf16.msra.mxu0 %v4207_v53  ;;  %1837 = vmatpush.bf16.msra.mxu1 %v4208_v2 }
 0x468   : > { %1850 = vmatpush.bf16.msra.mxu2 %v3430_v0  ;;  %1863 = vmatpush.bf16.msra.mxu3 %v4209_v57 }
 0x46b   : > { %1825 = vmatpush.bf16.msra.mxu0 %v4210_v63  ;;  %1838 = vmatpush.bf16.msra.mxu1 %v4211_v51 }
 0x46c   : > { %1851 = vmatpush.bf16.msra.mxu2 %v4212_v12  ;;  %1864 = vmatpush.bf16.msra.mxu3 %v4213_v45  ;;  %v4322_v12 = vld [vmem:[#allocation93_spill] sm:$0xff] }
 0x46f   : > { %1826 = vmatpush.bf16.msra.mxu0 %v4214_v37  ;;  %1839 = vmatpush.bf16.msra.mxu1 %v4215_v5 }
 0x470   : > { %1852 = vmatpush.bf16.msra.mxu2 %v3454_v46  ;;  %1865 = vmatpush.bf16.msra.mxu3 %v3457_v49 }
 0x473   : > { %1827 = vmatpush.bf16.msra.mxu0 %v3462_v10  ;;  %1840 = vmatpush.bf16.msra.mxu1 %v3464_v43 }
 0x474   : > { %1853 = vmatpush.bf16.msra.mxu2 %v3466_v32  ;;  %1866 = vmatpush.bf16.msra.mxu3 %v3469_v47 }
 0x4d2   : > { %v1698_v0 = vpop.f32.mrf.mxu0  ;;  %v1711_v42 = vpop.f32.mrf.mxu1 }
 0x4d3   : > { %v1699_v48 = vadd.f32 %v1698_v0, %v4316_v13  ;;  %v1712_v52 = vadd.f32 %v1711_v42, %v4317_v50 }
 0x4d9   : > { %v1724_v31 = vpop.f32.mrf.mxu2  ;;  %v1737_v6 = vpop.f32.mrf.mxu3 }
 0x4da   : > { %v1700_v55 = vpop.f32.mrf.mxu0  ;;  %v1713_v26 = vpop.f32.mrf.mxu1  ;;  %v1738_v36 = vadd.f32 %v1737_v6, %v4318_v8  ;;  %v1725_v21 = vadd.f32 %v1724_v31, %v3564_v16 }
 0x4e1   : > { %v1726_v27 = vpop.f32.mrf.mxu2  ;;  %v1739_v14 = vpop.f32.mrf.mxu3 }
 0x4e2   : > { %v1757_v28 = vpop.f32.mrf.mxu0  ;;  %v1770_v46 = vpop.f32.mrf.mxu1 }
 0x4e3   : > { %v1800_v49 = vadd.f32 %v1757_v28, %v4319_v1  ;;  %v1801_v10 = vadd.f32 %v1770_v46, %v4320_v18 }
 0x4e5   : > { %2706 = vtanh.f32 %v1800_v49 }
 0x4e6   : > { %2708 = vtanh.f32 %v1801_v10 }
 0x4e9   : > { %v1783_v43 = vpop.f32.mrf.mxu2  ;;  %v1796_v32 = vpop.f32.mrf.mxu3 }
 0x4ea   : > { %v1803_v47 = vadd.f32 %v1796_v32, %v4321_v11  ;;  %v1759_v58 = vpop.f32.mrf.mxu0  ;;  %v1772_v5 = vpop.f32.mrf.mxu1  ;;  %v1802_v53 = vadd.f32 %v1783_v43, %v4322_v12 }
 0x4eb   : > { %v2707_v37 = vpop.eup %2706 }
 0x4ec   : > { %v2709_v45 = vpop.eup %2708  ;;  %2710 = vtanh.f32 %v1803_v47  ;;  %v1808_v57 = vmul.f32 0.5, %v2707_v37 }
 0x4ed   : > { %v1809_v2 = vmul.f32 0.5, %v2709_v45  ;;  %2712 = vtanh.f32 %v1802_v53 }
 0x4ee   : > { %v1811_v25 = vadd.f32 0.5, %v1808_v57 }
 0x4ef   : > { %v1812_v63 = vadd.f32 0.5, %v1809_v2 }
 0x4f1   : > { %v1785_v51 = vpop.f32.mrf.mxu2  ;;  %v1798_v41 = vpop.f32.mrf.mxu3  ;;  %v1814_v33 = vmul.f32 %v1812_v63, %v3788_v40 }
 0x4f2   : > { %v2711_v20 = vpop.eup %2710 }
 0x4f3   : > { %v1815_v7 = vmul.f32 %v2711_v20, %v1811_v25  ;;  %v2713_v60 = vpop.eup %2712 }
 0x4f4   : > { %v1810_v30 = vmul.f32 0.5, %v2713_v60 }
 0x4f5   : > { %v1816_v29 = vadd.f32 %v1815_v7, %v1814_v33 }
 0x4f6   : > { %v1813_v34 = vadd.f32 0.5, %v1810_v30 }
 0x4f7   : > { %2714 = vtanh.f32 %v1816_v29  ;;  %1888 = vst [vmem:[#allocation3] sm:$0xff] %v1816_v29 }
 0x4fd   : > { %v2715_v39 = vpop.eup %2714 }
 0x4fe   : > { %v1818_v44 = vmul.f32 %v2715_v39, %v1813_v34 }
 0x500   : > { %v1819_v54 = vpack.c.bf16 %v1818_v44, %v1818_v44  ;;  %1887 = vst [vmem:[#allocation3 + $0x10] sm:$0xff] %v1818_v44 }
 0x502   : > { %1828 = vmatmul.bf16.vlgmr.msra.gmra.mxu0 %v1819_v54  ;;  %1841 = vmatmul.bf16.vlgmr.msra.gmra.mxu1 %v1819_v54 }
 0x503   : > { %1854 = vmatmul.bf16.vlgmr.msra.gmra.mxu2 %v1819_v54  ;;  %1867 = vmatmul.bf16.vlgmr.msra.gmra.mxu3 %v1819_v54 }
 0x57f   : > { %v1829_v40 = vpop.f32.mrf.mxu0  ;;  %v1842_v22 = vpop.f32.mrf.mxu1 }
 0x580   : > { %v1830_v17 = vadd.f32 %v1829_v40, %v1699_v48  ;;  %v1843_v15 = vadd.f32 %v1842_v22, %v1712_v52 }
 0x582   : > { %2716 = vtanh.f32 %v1830_v17 }
 0x583   : > { %2718 = vtanh.f32 %v1843_v15 }
 0x586   : > { %v1855_v38 = vpop.f32.mrf.mxu2  ;;  %v1868_v35 = vpop.f32.mrf.mxu3 }
 0x587   : > { %v1869_v62 = vadd.f32 %v1868_v35, %v1738_v36  ;;  %v1831_v61 = vpop.f32.mrf.mxu0  ;;  %v1844_v19 = vpop.f32.mrf.mxu1  ;;  %v1856_v13 = vadd.f32 %v1855_v38, %v1725_v21 }
 0x588   : > { %v2717_v59 = vpop.eup %2716 }
 0x589   : > { %v2719_v3 = vpop.eup %2718  ;;  %2720 = vtanh.f32 %v1869_v62  ;;  %v1876_v50 = vmul.f32 0.5, %v2717_v59 }
 0x58a   : > { %v1877_v4 = vmul.f32 0.5, %v2719_v3  ;;  %2722 = vtanh.f32 %v1856_v13 }
 0x58b   : > { %v1879_v0 = vadd.f32 0.5, %v1876_v50 }
 0x58c   : > { %v1880_v23 = vadd.f32 0.5, %v1877_v4 }
 0x58e   : > { %v1857_v9 = vpop.f32.mrf.mxu2  ;;  %v1870_v24 = vpop.f32.mrf.mxu3  ;;  %v1882_v42 = vmul.f32 %v1880_v23, %v3838_v56 }
 0x58f   : > { %v2721_v8 = vpop.eup %2720 }
 0x590   : > { %v1883_v6 = vmul.f32 %v2721_v8, %v1879_v0  ;;  %v2723_v16 = vpop.eup %2722 }
 0x591   : > { %v1878_v55 = vmul.f32 0.5, %v2723_v16 }
 0x592   : > { %v1884_v31 = vadd.f32 %v1883_v6, %v1882_v42 }
 0x593   : > { %v1881_v26 = vadd.f32 0.5, %v1878_v55 }
 0x594   : > { %2724 = vtanh.f32 %v1884_v31  ;;  %1890 = vst [vmem:[#allocation3 + $0x8] sm:$0xff] %v1884_v31 }
 0x59a   : > { %v2725_v27 = vpop.eup %2724 }
 0x59b   : > { %v1886_v14 = vmul.f32 %v2725_v27, %v1881_v26 }
 0x59d   : > { %1889 = vst [vmem:[#allocation3 + $0x18] sm:$0xff] %v1886_v14 }
 0x59e   : > { %1891 = vst [vmem:[#allocation13] sm:$0xff] %v1886_v14 }
 0x59f   : > { %2556 = dma.vmem_to_hbm [thread:$0]  (%p2585_p1), %s1901_s28, 128, %s1903_s20, [#allocation6]  }
 0x5a0   : > { %2941 = dma.done.wait (%p2585_p1), [#allocation6], 128  }
 0x5a1   : > { %2943 = vsyncadd (%p2585_p1), [#allocation6], 4294967168 }
 0x5a2 PF: > { %s22_s26 = sadd.s32 1, %s2966_s26   ;;  %s4324_s21 = smov %s2950_s22 }
 0x5a3   : > { %p19_p3 = scmp.ge.s32.totalorder %s22_s26, 4   ;;  %s4325_s22 = smov %s2954_s23 }
 0x5a4   : > { %s4326_s23 = smov %s3107_s17  ;;  %s4327_s24 = smov %s2962_s25 }
 0x5a5   : > { %s4328_s25 = smov %s4330_s15  ;;  %21 = sbr.rel (!%p19_p3) target bundleno = 9 (0x9), region = 109 }
 0x5aa   :  { %1916 = vsyncpa [#allocation5], 1 }
 0x5ab   :  { %1918 = vsyncpa [#allocation5 + $0x1], 1 }
 0x5ac   :  { %1919 = vsyncpa [#allocation8], 1 }
 0x5ad   :  { %1920 = vsyncpa [#allocation11], 1 }
 0x5ae   :  { %1921 = vsyncpa [#allocation6], 1 }
 0x5af   :  { %1923 = vsyncpa [#allocation6 + $0x1], 1 }

</bundles_post_ra>
